<compile_context>
chip_gen: v7x
topology: tpu7x:2x2x1
jax: 0.10.0
libtpu: 0.0.40
codegen_flags: <defaults>
</compile_context>

<pallas_src>
import jax
import jax.numpy as jnp
from jax.experimental import pallas as pl
from jax.experimental.pallas import tpu as pltpu


def head_kernel(x_ref, wa_ref, wm_ref, b_ref, o_ref):
    # x_ref: (TB, C, HW) bf16 feature tile — channels on sublanes, spatial on lanes.
    hw = x_ref.shape[-1]

    # Avg pool: f32 accumulation directly on the bf16 tile (no full f32 copy).
    avg = (jnp.sum(x_ref[...], axis=-1, dtype=jnp.float32) * (1.0 / hw))
    avg = avg.astype(jnp.bfloat16)                       # (TB, C) — C on lanes
    # Max pool: lane-axis reduce in bf16 (XLU slot is otherwise idle here).
    mx = jnp.max(x_ref[...], axis=-1)                    # (TB, C) bf16

    # Fused eval-mode head: cat([avg, mx]) @ (Wr @ Wf) + (br @ Wf + bf), with the
    # combined weight split into its avg/max halves so no lane-axis concat is needed.
    out = jnp.dot(avg, wa_ref[...], preferred_element_type=jnp.float32)
    out = out + jnp.dot(mx, wm_ref[...], preferred_element_type=jnp.float32)
    out = out + b_ref[...]

    o_ref[...] = out.astype(o_ref.dtype)


def _vmem_budget_bytes():
    """~75% of this generation's physical VMEM (v5e/v6e: 96 MiB, v7x: 48 MiB)."""
    cap = None
    try:
        cap = getattr(pltpu.get_tpu_info(), "vmem_capacity_bytes", None)
    except Exception:
        cap = None
    if not cap:
        cap = 64 << 20  # conservative fallback: v7x per-TensorCore VMEM
    return int(cap) * 3 // 4


def _pick_tb(B, cap):
    """Largest multiple-of-8 divisor of B that is <= cap (None if B % 8 != 0)."""
    cap = max(8, min(cap, B))
    best = None
    t = 8
    while t <= cap:
        if B % t == 0:
            best = t
        t += 8
    return best


def net_head(feats, w_reduce, b_reduce, w_fc, b_fc):
    """Head of Net (eval mode).

    feats    : (B, C, H*W)  backbone feature map in its native NCHW order
               (pure reshape of (B,C,H,W) — no transpose), bf16 or f32
    w_reduce : (2C, 512)    Conv2d(2C, 512, 1) weight laid out as a matmul weight
    b_reduce : (512,)       Conv bias
    w_fc     : (512, 49)    Linear weight, transposed
    b_fc     : (49,)        Linear bias
    returns  : (B, 49) float32 logits
    """
    B, C, HW = feats.shape
    C2, RED = w_reduce.shape
    RED2, NCLS = w_fc.shape
    assert C2 == 2 * C and RED2 == RED

    f32 = jnp.float32
    # ---- eval-mode weight fusion (Dropout is identity, no nonlinearity between the
    # 1x1 conv and the Linear). Inference-only: do NOT reuse for training.
    w_comb = w_reduce.astype(f32) @ w_fc.astype(f32)                      # (2C, 49)
    b_comb = b_reduce.astype(f32) @ w_fc.astype(f32) + b_fc.astype(f32)   # (49,)

    # ---- lane-dense output: pad classes 49 -> 128
    npad = ((NCLS + 127) // 128) * 128
    w_comb = jnp.pad(w_comb, ((0, 0), (0, npad - NCLS)))
    b_comb = jnp.pad(b_comb, (0, npad - NCLS)).reshape(1, npad)

    # Split into avg / max halves (torch.cat order: avg first, max second); feed the
    # MXU bf16 operands (f32 accumulate) — halves weight VMEM and HBM traffic.
    w_avg = w_comb[:C].astype(jnp.bfloat16)    # (C, npad)
    w_max = w_comb[C:].astype(jnp.bfloat16)    # (C, npad)

    # ---- batch-tile selection: biggest tile whose double-buffered feature stream
    # fits the VMEM budget, but keep >= 2 grid steps so v7x can shard over both TCs.
    vmem_budget = _vmem_budget_bytes()
    elt = jnp.dtype(feats.dtype).itemsize
    sub = 32 // elt                                       # sublane packing (bf16: 16)
    c_pad = ((C + sub - 1) // sub) * sub
    hw_pad = ((HW + 127) // 128) * 128
    per_row = c_pad * hw_pad * elt                        # padded bytes / batch element
    fixed = 2 * (2 * C * npad * 2 + npad * 4)             # double-buffered weights+bias
    out_row = npad * 4 * 2                                # double-buffered f32 output
    tb_cap = max(8, (vmem_budget - fixed) // (2 * per_row + out_row))
    if B >= 16:
        tb_cap = min(tb_cap, B // 2)                      # >= 2 grid steps when possible
    tb = _pick_tb(B, tb_cap)
    if tb is None:
        tb = B                                            # B not a multiple of 8
    grid = (B // tb,)

    feat_bytes = feats.size * elt
    cost = pl.CostEstimate(
        flops=2 * B * (2 * C) * npad + 2 * B * C * HW,
        transcendentals=0,
        bytes_accessed=feat_bytes + (2 * C * npad) * 2 + npad * 4 + B * npad * 4,
    )

    out = pl.pallas_call(
        head_kernel,
        out_shape=jax.ShapeDtypeStruct((B, npad), jnp.float32),
        grid=grid,
        in_specs=[
            # Streamed per batch tile; HW kept untiled (full-dim block) so the max
            # pool never sees padding; (8,128) rule satisfied via full last-2 dims.
            pl.BlockSpec((tb, C, HW), lambda b: (b, 0, 0)),
            # Constant-index weights/bias stay resident (no re-DMA across steps).
            pl.BlockSpec((C, npad), lambda b: (0, 0)),
            pl.BlockSpec((C, npad), lambda b: (0, 0)),
            pl.BlockSpec((1, npad), lambda b: (0, 0)),
        ],
        out_specs=pl.BlockSpec((tb, npad), lambda b: (b, 0)),
        compiler_params=pltpu.CompilerParams(
            dimension_semantics=("parallel",),            # megacore / v7x dual-TC
            vmem_limit_bytes=vmem_budget,
        ),
        cost_estimate=cost,
    )(feats, w_avg, w_max, b_comb)

    return out[:, :NCLS]


if __name__ == "__main__":
    # Small synthetic shapes consistent with the forward pass:
    #   backbone feature map (B, C, H, W); real efficientnet_b3 has C=1536, HW~100.
    B, C, H, W = 16, 128, 8, 8
    RED, NCLS = 512, 49

    key = jax.random.PRNGKey(0)
    k_x, k_wr, k_br, k_wf, k_bf = jax.random.split(key, 5)

    # Backbone output in native NCHW; the kernel consumes (B, C, H*W) — a pure
    # reshape, so no standalone layout-transpose pass over the feature map in HBM.
    # bf16 feature streaming is a documented inference-precision choice.
    x_nchw = jax.random.normal(k_x, (B, C, H, W), dtype=jnp.float32)
    feats = x_nchw.reshape(B, C, H * W).astype(jnp.bfloat16)

    # Conv2d(2C, 512, 1) weight (512, 2C, 1, 1) -> matmul weight (2C, 512)
    w_conv = jax.random.normal(k_wr, (RED, 2 * C), dtype=jnp.float32) * 0.02
    w_reduce = w_conv.T                                      # (2C, 512)
    b_reduce = jax.random.normal(k_br, (RED,), dtype=jnp.float32) * 0.02

    # Linear(512, 49) weight (49, 512) -> (512, 49)
    w_lin = jax.random.normal(k_wf, (NCLS, RED), dtype=jnp.float32) * 0.02
    w_fc = w_lin.T                                           # (512, 49)
    b_fc = jax.random.normal(k_bf, (NCLS,), dtype=jnp.float32) * 0.02

    out = net_head(feats, w_reduce, b_reduce, w_fc, b_fc)
    out = jax.block_until_ready(out)

    # Pure-JAX reference of the original (unfused) eval-mode head on the same
    # bf16 feature values.
    xf = feats.astype(jnp.float32)
    avg = jnp.mean(xf, axis=-1)
    mx = jnp.max(xf, axis=-1)
    feat = jnp.concatenate([avg, mx], axis=-1)
    ref = (feat @ w_reduce + b_reduce) @ w_fc + b_fc

    assert out.shape == (B, NCLS)
    err = float(jnp.max(jnp.abs(out - ref)))
    # Tolerance re-validated for bf16 MXU operands with f32 accumulation.
    assert jnp.allclose(out, ref, atol=2e-2, rtol=2e-2), err

    print("KERNEL_OK")
</pallas_src>

<mosaic_0001>
module attributes {stable_mosaic.version = 11 : i64} {
  func.func @head_kernel(%arg0: i32, %arg1: memref<8x128x64xbf16, #tpu.memory_space<vmem>>, %arg2: memref<128x128xbf16, #tpu.memory_space<vmem>>, %arg3: memref<128x128xbf16, #tpu.memory_space<vmem>>, %arg4: memref<1x128xf32, #tpu.memory_space<vmem>>, %arg5: memref<8x128xf32, #tpu.memory_space<vmem>>) attributes {dimension_semantics = [#tpu.dimension_semantics<parallel>], iteration_bounds = array<i64: 2>, scalar_prefetch = 0 : i64, scratch_operands = 0 : i64, tpu.core_type = #tpu.core_type<tc>, window_params = [{transform_indices = @transform_0, window_bounds = array<i64: 8, 128, 64>}, {pipeline_mode = #tpu.pipeline_mode<synchronous>, transform_indices = @transform_1, window_bounds = array<i64: 128, 128>}, {pipeline_mode = #tpu.pipeline_mode<synchronous>, transform_indices = @transform_2, window_bounds = array<i64: 128, 128>}, {pipeline_mode = #tpu.pipeline_mode<synchronous>, transform_indices = @transform_3, window_bounds = array<i64: 1, 128>}, {transform_indices = @transform_4, window_bounds = array<i64: 8, 128>}]} {
    %c0 = arith.constant 0 : index
    %c0_0 = arith.constant 0 : index
    %c0_1 = arith.constant 0 : index
    %0 = vector.load %arg1[%c0, %c0_0, %c0_1] : memref<8x128x64xbf16, #tpu.memory_space<vmem>>, vector<8x128x64xbf16>
    %1 = arith.extf %0 : vector<8x128x64xbf16> to vector<8x128x64xf32>
    %cst = arith.constant dense<0.000000e+00> : vector<8x128xf32>
    %2 = vector.multi_reduction <add>, %1, %cst [2] : vector<8x128x64xf32> to vector<8x128xf32>
    %cst_2 = arith.constant 1.562500e-02 : f32
    %3 = vector.broadcast %cst_2 : f32 to vector<8x128xf32>
    %4 = arith.mulf %2, %3 : vector<8x128xf32>
    %5 = arith.truncf %4 : vector<8x128xf32> to vector<8x128xbf16>
    %c0_3 = arith.constant 0 : index
    %c0_4 = arith.constant 0 : index
    %c0_5 = arith.constant 0 : index
    %6 = vector.load %arg1[%c0_3, %c0_4, %c0_5] : memref<8x128x64xbf16, #tpu.memory_space<vmem>>, vector<8x128x64xbf16>
    %cst_6 = arith.constant dense<0xFF80> : vector<8x128xbf16>
    %7 = vector.multi_reduction <maximumf>, %6, %cst_6 [2] : vector<8x128x64xbf16> to vector<8x128xbf16>
    %c0_7 = arith.constant 0 : index
    %c0_8 = arith.constant 0 : index
    %8 = vector.load %arg2[%c0_7, %c0_8] : memref<128x128xbf16, #tpu.memory_space<vmem>>, vector<128x128xbf16>
    %cst_9 = arith.constant dense<0.000000e+00> : vector<8x128xf32>
    %9 = tpu.matmul %5, %8, %cst_9 {dimension_numbers = #tpu.dot_dimension_numbers<[1], [0], [0], [1], [0, 0, 1, 1], [], []>} : vector<8x128xbf16>, vector<128x128xbf16>, vector<8x128xf32> -> vector<8x128xf32>
    %c0_10 = arith.constant 0 : index
    %c0_11 = arith.constant 0 : index
    %10 = vector.load %arg3[%c0_10, %c0_11] : memref<128x128xbf16, #tpu.memory_space<vmem>>, vector<128x128xbf16>
    %cst_12 = arith.constant dense<0.000000e+00> : vector<8x128xf32>
    %11 = tpu.matmul %7, %10, %cst_12 {dimension_numbers = #tpu.dot_dimension_numbers<[1], [0], [0], [1], [0, 0, 1, 1], [], []>} : vector<8x128xbf16>, vector<128x128xbf16>, vector<8x128xf32> -> vector<8x128xf32>
    %12 = arith.addf %9, %11 : vector<8x128xf32>
    %c0_13 = arith.constant 0 : index
    %c0_14 = arith.constant 0 : index
    %13 = vector.load %arg4[%c0_13, %c0_14] : memref<1x128xf32, #tpu.memory_space<vmem>>, vector<1x128xf32>
    %14 = vector.broadcast %13 : vector<1x128xf32> to vector<8x128xf32>
    %15 = arith.addf %12, %14 : vector<8x128xf32>
    %c0_15 = arith.constant 0 : index
    %c0_16 = arith.constant 0 : index
    %16 = vector.load %arg5[%c0_15, %c0_16] : memref<8x128xf32, #tpu.memory_space<vmem>>, vector<8x128xf32>
    tpu.vector_store %arg5[%c0_15, %c0_16], %15 {strides = array<i32>} : memref<8x128xf32, #tpu.memory_space<vmem>>, vector<8x128xf32>,
    return
  }
  func.func @transform_0(%arg0: i32) -> (i32, i32, i32) {
    %c0_i32 = arith.constant 0 : i32
    %c0_i32_0 = arith.constant 0 : i32
    %c0_i32_1 = arith.constant 0 : i32
    return %arg0, %c0_i32, %c0_i32_0 : i32, i32, i32
  }
  func.func @transform_1(%arg0: i32) -> (i32, i32) {
    %c0_i32 = arith.constant 0 : i32
    %c0_i32_0 = arith.constant 0 : i32
    %c0_i32_1 = arith.constant 0 : i32
    return %c0_i32, %c0_i32_0 : i32, i32
  }
  func.func @transform_2(%arg0: i32) -> (i32, i32) {
    %c0_i32 = arith.constant 0 : i32
    %c0_i32_0 = arith.constant 0 : i32
    %c0_i32_1 = arith.constant 0 : i32
    return %c0_i32, %c0_i32_0 : i32, i32
  }
  func.func @transform_3(%arg0: i32) -> (i32, i32) {
    %c0_i32 = arith.constant 0 : i32
    %c0_i32_0 = arith.constant 0 : i32
    %c0_i32_1 = arith.constant 0 : i32
    return %c0_i32, %c0_i32_0 : i32, i32
  }
  func.func @transform_4(%arg0: i32) -> (i32, i32) {
    %c0_i32 = arith.constant 0 : i32
    %c0_i32_0 = arith.constant 0 : i32
    return %arg0, %c0_i32 : i32, i32
  }
}

</mosaic_0001>

<bundles_post_ra>
// kernel: tpu_custom_call.1
= control target key start
LH: loop header
LB: loop body
LE: loop exit
PB: predicated region body
PF: predicated region fallthrough
CT: control target
= control target key end

     0   :  { %9 = vsyncpa [#allocation3], 0  ;;  %s5885_s0 = inlined_call_operand.vmem [shape: bf16[16,128,64], index: 0, kind: input, shape index: {}]   ;;  %s5886_s1 = inlined_call_operand.vmem [shape: bf16[128,128], index: 1, kind: input, shape index: {}]   ;;  %s5887_s2 = inlined_call_operand.vmem [shape: bf16[128,128], index: 2, kind: input, shape index: {}]   ;;  %s5888_s3 = inlined_call_operand.vmem [shape: f32[1,128], index: 3, kind: input, shape index: {}]   ;;  %s5889_s4 = inlined_call_operand.hbm [shape: f32[16,128], index: 4, kind: output, shape index: {}]  }
   0x1   :  { %11 = vsyncpa [#allocation3 + $0x1], 0  ;;  %s4128_s15 = smov 0   ;;  %s4130_s16 = smov 0  }
   0x2   :  { %s4132_s17 = smov 0   ;;  %s4134_s18 = smov 0  }
   0x3 LB: > { %s4149_s19 = sadd.s32 4294967295, %s4098_s18   ;;  %s3672_s20 = sadd.s32 4294967294, %s4098_s18   ;;  %s4098_s18 = sphi %s4134_s18, %s6052_s18   ;;  %s4094_s17 = sphi %s4132_s17, %s6051_s17   ;;  %s4090_s16 = sphi %s4130_s16, %s6050_s16   ;;  %s4086_s15 = sphi %s4128_s15, %s6049_s15  }
   0x4   : > { %s4153_s21 = sadd.s32 1, %s4098_s18   ;;  %s113_s22 = sadd.s32 1, %s4094_s17 }
   0x5   : > { %s110_s23 = ssub.s32 %s4098_s18, %s4153_s21  ;;  %p123_p0 = scmp.ne.s32.totalorder %s4094_s17, %s4090_s16 }
   0x6   : > { %p111_p1 = scmp.eq.s32.totalorder %s110_s23, 0  ;;  %p124_p2 = scmp.eq.s32.totalorder %s4149_s19, 1 }
   0x7   : > { %p129_p3 = scmp.ne.s32.totalorder %s4090_s16, %s4086_s15  ;;  %p130_p4 = scmp.eq.s32.totalorder %s3672_s20, 1 }
   0x8   : > { %s4164_s24 = scalar_select %p111_p1, %s4094_s17, %s113_s22  }
   0x9   : > { %p4166_p5 = por %p124_p2, %p123_p0  ;;  %p4170_p6 = por %p130_p4, %p129_p3 }
   0xa   : > { %p3675_p7 = scmp.ge.s32.totalorder %s4098_s18, 1  ;;  %p167_p8 = scmp.lt.s32.totalorder %s4098_s18, 3 }
   0xc   : > { %p168_p9 = pnand %p3675_p7, %p167_p8 }
   0xe   : > { %171 = sbr.rel (%p168_p9) target bundleno = 922 (0x39a), region = 36 }
  0x15   : > { %s3677_s27 = sshll.u32 %s4149_s19, 3  ;;  %vm459_vm0 = vcmask 523264   ;;  %vm1912_vm1 = vcmask 130112   ;;  %vm1919_vm2 = vcmask 195712   ;;  %vm1926_vm3 = vcmask 261312   ;;  %s191_s30 = sand.u32 1, %s4090_s16  }
  0x16   : > { %p195_p10 = scmp.lt.s32.totalorder %s3677_s27, 15  ;;  %vm1933_vm4 = vcmask 326912   ;;  %vm1940_vm5 = vcmask 392512   ;;  %vm5899_vm6 = vcmask 458112   ;;  %vm5900_vm7 = vcmask 523712   ;;  %s3762_s8 = sshll.u32 %s4149_s19, 7 }
  0x17   : > { %vm1961_vm8 = vcmask 589312   ;;  %vm1968_vm9 = vcmask 654912   ;;  %vm5901_vm10 = vcmask 720512   ;;  %vm5903_vm11 = vcmask 786112   ;;  %s5843_s13 = scalar_lea.hbm %s5889_s4, %s3762_s8  ;;  %s3600_s14 = scalar_lea.sflag [#allocation3], %s191_s30 }
  0x18   : > { %s6054_s27 = smov (!%p195_p10, %s3677_s27), 15  ;;  %vm5902_vm12 = vcmask 851712   ;;  %vm1996_vm13 = vcmask 917312   ;;  %vm2003_vm14 = vcmask 982912   ;;  %vm2010_vm15 = vcmask 1048512   ;;  %s4102_s20 = smov [#allocation2]  }
  0x19   : > { %s3765_s28 = sshll.u32 %s6054_s27, 6  ;;  %s4040_s22 = sshll.u32 %s4102_s20, 4  ;;  %s4041_s22 = int_to_ptr.vmem [resolvable:$false] %s4040_s22 }
  0x1a   : > { %s4180_s5 = scalar_lea.vmem %s5885_s0, %s3765_s28  ;;  %s4042_s23 = scalar_lea.vmem %s4041_s22, 256 }
  0x1b   : > { %v4183_v0 = vld [vmem:[%s4180_s5 + $0x8] sm:$0xff]   ;;  %v4186_v1 = vld [vmem:[%s4180_s5] sm:$0xff]   ;;  %v4193_v6 = vld [vmem:[%s4180_s5 + $0x10] sm:$0xff]  }
  0x1c   : > { %v333_v2 = vunpack.c.l.bf16 %v4183_v0  ;;  %v331_v3 = vunpack.c.l.bf16 %v4186_v1  ;;  %v334_v4 = vunpack.c.h.bf16 %v4183_v0  ;;  %v332_v5 = vunpack.c.h.bf16 %v4186_v1  ;;  %v210_v13 = vld [vmem:[%s4180_s5 + $0x18] sm:$0xff]   ;;  %v212_v18 = vld [vmem:[%s4180_s5 + $0x20] sm:$0xff]   ;;  %v214_v23 = vld [vmem:[%s4180_s5 + $0x28] sm:$0xff]  }
  0x1d   : > { %v336_v11 = vunpack.c.h.bf16 %v4193_v6  ;;  %v335_v12 = vunpack.c.l.bf16 %v4193_v6  ;;  %v338_v16 = vunpack.c.h.bf16 %v210_v13  ;;  %v337_v17 = vunpack.c.l.bf16 %v210_v13  ;;  %v216_v28 = vld [vmem:[%s4180_s5 + $0x30] sm:$0xff]   ;;  %v218_v33 = vld [vmem:[%s4180_s5 + $0x38] sm:$0xff]   ;;  %v4217_v38 = vld [vmem:[%s4180_s5 + $0x40] sm:$0xff]  }
  0x1e   : > { %v466_v7 = vsel %vm459_vm0, %v333_v2, 0.0  ;;  %v460_v8 = vsel %vm459_vm0, %v331_v3, 0.0  ;;  %v469_v9 = vsel %vm459_vm0, %v334_v4, 0.0  ;;  %v463_v10 = vsel %vm459_vm0, %v332_v5, 0.0  ;;  %v4224_v43 = vld [vmem:[%s4180_s5 + $0x48] sm:$0xff]   ;;  %v4231_v48 = vld [vmem:[%s4180_s5 + $0x50] sm:$0xff]  }
  0x1f   : > { %467 = vadd.xlane.f32.xlu1 %v466_v7  ;;  %461 = vadd.xlane.f32.xlu0 %v460_v8  ;;  %v475_v14 = vsel %vm459_vm0, %v336_v11, 0.0  ;;  %v472_v15 = vsel %vm459_vm0, %v335_v12, 0.0  ;;  %v340_v19 = vunpack.c.h.bf16 %v212_v18  ;;  %v339_v20 = vunpack.c.l.bf16 %v212_v18  ;;  %v4238_v53 = vld [vmem:[%s4180_s5 + $0x58] sm:$0xff]   ;;  %v228_v58 = vld [vmem:[%s4180_s5 + $0x60] sm:$0xff]   ;;  %v230_v63 = vld [vmem:[%s4180_s5 + $0x68] sm:$0xff]  }
  0x20   : > { %v481_v21 = vsel %vm459_vm0, %v338_v16, 0.0  ;;  %v478_v22 = vsel %vm459_vm0, %v337_v17, 0.0  ;;  %v342_v26 = vunpack.c.h.bf16 %v214_v23  ;;  %v341_v27 = vunpack.c.l.bf16 %v214_v23  ;;  %v232_v7 = vld [vmem:[%s4180_s5 + $0x70] sm:$0xff]   ;;  %v234_v12 = vld [vmem:[%s4180_s5 + $0x78] sm:$0xff]   ;;  %v4257_v17 = vld [vmem:[%s4180_s5 + $0x80] sm:$0xff]  }
  0x21   : > { %v487_v24 = vsel %vm459_vm0, %v340_v19, 0.0  ;;  %v484_v25 = vsel %vm459_vm0, %v339_v20, 0.0  ;;  %v344_v31 = vunpack.c.h.bf16 %v216_v28  ;;  %v343_v32 = vunpack.c.l.bf16 %v216_v28 }
  0x22   : > { %v493_v29 = vsel %vm459_vm0, %v342_v26, 0.0  ;;  %v490_v30 = vsel %vm459_vm0, %v341_v27, 0.0  ;;  %v346_v36 = vunpack.c.h.bf16 %v218_v33  ;;  %v345_v37 = vunpack.c.l.bf16 %v218_v33  ;;  %v4271_v27 = vld [vmem:[%s4180_s5 + $0x90] sm:$0xff]  }
  0x23   : > { %470 = vadd.xlane.f32.xlu1 %v469_v9  ;;  %464 = vadd.xlane.f32.xlu0 %v463_v10  ;;  %v499_v34 = vsel %vm459_vm0, %v344_v31, 0.0  ;;  %v496_v35 = vsel %vm459_vm0, %v343_v32, 0.0  ;;  %v348_v41 = vunpack.c.h.bf16 %v4217_v38  ;;  %v347_v42 = vunpack.c.l.bf16 %v4217_v38  ;;  %v4278_v32 = vld [vmem:[%s4180_s5 + $0x98] sm:$0xff]  }
  0x24   : > { %v505_v39 = vsel %vm459_vm0, %v346_v36, 0.0  ;;  %v502_v40 = vsel %vm459_vm0, %v345_v37, 0.0  ;;  %v350_v46 = vunpack.c.h.bf16 %v4224_v43  ;;  %v349_v47 = vunpack.c.l.bf16 %v4224_v43  ;;  %5908 = vst [vmem:[#allocation5_spill] sm:$0xff] %v4278_v32  ;;  %v244_v37 = vld [vmem:[%s4180_s5 + $0xa0] sm:$0xff]  }
  0x25   : > { %v511_v44 = vsel %vm459_vm0, %v348_v41, 0.0  ;;  %v508_v45 = vsel %vm459_vm0, %v347_v42, 0.0  ;;  %v352_v51 = vunpack.c.h.bf16 %v4231_v48  ;;  %v351_v52 = vunpack.c.l.bf16 %v4231_v48 }
  0x26   : > { %v517_v49 = vsel %vm459_vm0, %v350_v46, 0.0  ;;  %v514_v50 = vsel %vm459_vm0, %v349_v47, 0.0  ;;  %v354_v56 = vunpack.c.h.bf16 %v4238_v53  ;;  %v353_v57 = vunpack.c.l.bf16 %v4238_v53 }
  0x27   : > { %476 = vadd.xlane.f32.xlu1 %v475_v14  ;;  %473 = vadd.xlane.f32.xlu0 %v472_v15  ;;  %v523_v54 = vsel %vm459_vm0, %v352_v51, 0.0  ;;  %v520_v55 = vsel %vm459_vm0, %v351_v52, 0.0  ;;  %v356_v61 = vunpack.c.h.bf16 %v228_v58  ;;  %v355_v62 = vunpack.c.l.bf16 %v228_v58 }
  0x28   : > { %v529_v59 = vsel %vm459_vm0, %v354_v56, 0.0  ;;  %v526_v60 = vsel %vm459_vm0, %v353_v57, 0.0  ;;  %v358_v4 = vunpack.c.h.bf16 %v230_v63  ;;  %v357_v5 = vunpack.c.l.bf16 %v230_v63  ;;  %v250_v56 = vld [vmem:[%s4180_s5 + $0xb8] sm:$0xff]  }
  0x29   : > { %v535_v2 = vsel %vm459_vm0, %v356_v61, 0.0  ;;  %v532_v3 = vsel %vm459_vm0, %v355_v62, 0.0  ;;  %v360_v10 = vunpack.c.h.bf16 %v232_v7  ;;  %v359_v11 = vunpack.c.l.bf16 %v232_v7  ;;  %v4297_v61 = vld [vmem:[%s4180_s5 + $0xc0] sm:$0xff]  }
  0x2a   : > { %v541_v8 = vsel %vm459_vm0, %v358_v4, 0.0  ;;  %v538_v9 = vsel %vm459_vm0, %v357_v5, 0.0  ;;  %v362_v15 = vunpack.c.h.bf16 %v234_v12  ;;  %v361_v16 = vunpack.c.l.bf16 %v234_v12  ;;  %v4304_v4 = vld [vmem:[%s4180_s5 + $0xc8] sm:$0xff]  }
  0x2b   : > { %482 = vadd.xlane.f32.xlu1 %v481_v21  ;;  %479 = vadd.xlane.f32.xlu0 %v478_v22  ;;  %v547_v13 = vsel %vm459_vm0, %v360_v10, 0.0  ;;  %v544_v14 = vsel %vm459_vm0, %v359_v11, 0.0  ;;  %v364_v20 = vunpack.c.h.bf16 %v4257_v17  ;;  %v363_v21 = vunpack.c.l.bf16 %v4257_v17  ;;  %v4264_v22 = vld [vmem:[%s4180_s5 + $0x88] sm:$0xff]   ;;  %v4311_v10 = vld [vmem:[%s4180_s5 + $0xd0] sm:$0xff]  }
  0x2c   : > { %v553_v18 = vsel %vm459_vm0, %v362_v15, 0.0  ;;  %v550_v19 = vsel %vm459_vm0, %v361_v16, 0.0  ;;  %v365_v26 = vunpack.c.l.bf16 %v4264_v22  ;;  %v367_v31 = vunpack.c.l.bf16 %v4271_v27  ;;  %v4318_v15 = vld [vmem:[%s4180_s5 + $0xd8] sm:$0xff]  }
  0x2d   : > { %v559_v23 = vsel %vm459_vm0, %v364_v20, 0.0  ;;  %v369_v36 = vunpack.c.l.bf16 %v4278_v32  ;;  %v372_v41 = vunpack.c.h.bf16 %v244_v37  ;;  %v371_v42 = vunpack.c.l.bf16 %v244_v37  ;;  %5909 = vst [vmem:[#allocation6_spill] sm:$0xff] %v4318_v15 }
  0x2e   : > { %v385_v20 = vunpack.c.l.bf16 %v4318_v15 }
  0x2f   : > { %488 = vadd.xlane.f32.xlu1 %v487_v24  ;;  %485 = vadd.xlane.f32.xlu0 %v484_v25  ;;  %v556_v24 = vsel %vm459_vm0, %v363_v21, 0.0  ;;  %v366_v25 = vunpack.c.h.bf16 %v4264_v22  ;;  %v580_v46 = vsel %vm459_vm0, %v371_v42, 0.0  ;;  %v260_v21 = vld [vmem:[%s4180_s5 + $0xe0] sm:$0xff]  }
  0x31   : > { %v565_v28 = vsel %vm459_vm0, %v366_v25, 0.0  ;;  %v388_v25 = vunpack.c.h.bf16 %v260_v21 }
  0x33   : > { %494 = vadd.xlane.f32.xlu1 %v493_v29  ;;  %491 = vadd.xlane.f32.xlu0 %v490_v30  ;;  %v562_v29 = vsel %vm459_vm0, %v365_v26, 0.0  ;;  %v368_v30 = vunpack.c.h.bf16 %v4271_v27  ;;  %v387_v26 = vunpack.c.l.bf16 %v260_v21 }
  0x35   : > { %v571_v33 = vsel %vm459_vm0, %v368_v30, 0.0  ;;  %v628_v30 = vsel %vm459_vm0, %v387_v26, 0.0 }
  0x37   : > { %500 = vadd.xlane.f32.xlu1 %v499_v34  ;;  %497 = vadd.xlane.f32.xlu0 %v496_v35  ;;  %v568_v34 = vsel %vm459_vm0, %v367_v31, 0.0  ;;  %v370_v35 = vunpack.c.h.bf16 %v4278_v32 }
  0x3b   : > { %506 = vadd.xlane.f32.xlu1 %v505_v39  ;;  %503 = vadd.xlane.f32.xlu0 %v502_v40  ;;  %v577_v39 = vsel %vm459_vm0, %v370_v35, 0.0  ;;  %v574_v40 = vsel %vm459_vm0, %v369_v36, 0.0 }
  0x3f   : > { %512 = vadd.xlane.f32.xlu1 %v511_v44  ;;  %509 = vadd.xlane.f32.xlu0 %v508_v45  ;;  %v246_v44 = vld [vmem:[%s4180_s5 + $0xa8] sm:$0xff]   ;;  %v583_v45 = vsel %vm459_vm0, %v372_v41, 0.0 }
  0x40   : > { %v374_v47 = vunpack.c.h.bf16 %v246_v44 }
  0x42   : > { %v589_v51 = vsel %vm459_vm0, %v374_v47, 0.0 }
  0x43   : > { %518 = vadd.xlane.f32.xlu1 %v517_v49  ;;  %515 = vadd.xlane.f32.xlu0 %v514_v50  ;;  %v373_v49 = vunpack.c.l.bf16 %v246_v44  ;;  %v248_v50 = vld [vmem:[%s4180_s5 + $0xb0] sm:$0xff]  }
  0x45   : > { %v586_v52 = vsel %vm459_vm0, %v373_v49, 0.0 }
  0x47   : > { %524 = vadd.xlane.f32.xlu1 %v523_v54  ;;  %521 = vadd.xlane.f32.xlu0 %v520_v55  ;;  %v376_v54 = vunpack.c.h.bf16 %v248_v50  ;;  %v375_v55 = vunpack.c.l.bf16 %v248_v50 }
  0x49   : > { %v595_v57 = vsel %vm459_vm0, %v376_v54, 0.0  ;;  %v592_v58 = vsel %vm459_vm0, %v375_v55, 0.0 }
  0x4b   : > { %530 = vadd.xlane.f32.xlu1 %v529_v59  ;;  %527 = vadd.xlane.f32.xlu0 %v526_v60  ;;  %v378_v59 = vunpack.c.h.bf16 %v250_v56  ;;  %v377_v60 = vunpack.c.l.bf16 %v250_v56 }
  0x4d   : > { %v601_v62 = vsel %vm459_vm0, %v378_v59, 0.0  ;;  %v598_v63 = vsel %vm459_vm0, %v377_v60, 0.0 }
  0x4f   : > { %536 = vadd.xlane.f32.xlu1 %v535_v2  ;;  %533 = vadd.xlane.f32.xlu0 %v532_v3  ;;  %v380_v2 = vunpack.c.h.bf16 %v4297_v61  ;;  %v379_v3 = vunpack.c.l.bf16 %v4297_v61 }
  0x51   : > { %v607_v5 = vsel %vm459_vm0, %v380_v2, 0.0  ;;  %v604_v7 = vsel %vm459_vm0, %v379_v3, 0.0  ;;  %v274_v2 = vld [vmem:[%s4180_s5 + $0x118] sm:$0xff]  }
  0x53   : > { %542 = vadd.xlane.f32.xlu1 %v541_v8  ;;  %539 = vadd.xlane.f32.xlu0 %v538_v9  ;;  %v382_v8 = vunpack.c.h.bf16 %v4304_v4  ;;  %v381_v9 = vunpack.c.l.bf16 %v4304_v4 }
  0x55   : > { %v613_v11 = vsel %vm459_vm0, %v382_v8, 0.0  ;;  %v610_v12 = vsel %vm459_vm0, %v381_v9, 0.0  ;;  %v401_v8 = vunpack.c.l.bf16 %v274_v2  ;;  %v276_v9 = vld [vmem:[%s4180_s5 + $0x120] sm:$0xff]  }
  0x57   : > { %548 = vadd.xlane.f32.xlu1 %v547_v13  ;;  %545 = vadd.xlane.f32.xlu0 %v544_v14  ;;  %v384_v13 = vunpack.c.h.bf16 %v4311_v10  ;;  %v383_v14 = vunpack.c.l.bf16 %v4311_v10 }
  0x59   : > { %v619_v16 = vsel %vm459_vm0, %v384_v13, 0.0  ;;  %v670_v13 = vsel %vm459_vm0, %v401_v8, 0.0 }
  0x5b   : > { %554 = vadd.xlane.f32.xlu1 %v553_v18  ;;  %551 = vadd.xlane.f32.xlu0 %v550_v19  ;;  %v616_v18 = vsel %vm459_vm0, %v383_v14, 0.0  ;;  %v386_v19 = vunpack.c.h.bf16 %v4318_v15  ;;  %v404_v14 = vunpack.c.h.bf16 %v276_v9 }
  0x5f   : > { %560 = vadd.xlane.f32.xlu1 %v559_v23  ;;  %557 = vadd.xlane.f32.xlu0 %v556_v24  ;;  %v625_v23 = vsel %vm459_vm0, %v386_v19, 0.0  ;;  %v622_v24 = vsel %vm459_vm0, %v385_v20, 0.0 }
  0x63   : > { %566 = vadd.xlane.f32.xlu1 %v565_v28  ;;  %563 = vadd.xlane.f32.xlu0 %v562_v29  ;;  %v262_v28 = vld [vmem:[%s4180_s5 + $0xe8] sm:$0xff]   ;;  %v631_v29 = vsel %vm459_vm0, %v388_v25, 0.0 }
  0x64   : > { %v390_v31 = vunpack.c.h.bf16 %v262_v28 }
  0x66   : > { %v637_v35 = vsel %vm459_vm0, %v390_v31, 0.0 }
  0x67   : > { %572 = vadd.xlane.f32.xlu1 %v571_v33  ;;  %569 = vadd.xlane.f32.xlu0 %v568_v34  ;;  %v389_v33 = vunpack.c.l.bf16 %v262_v28  ;;  %v264_v34 = vld [vmem:[%s4180_s5 + $0xf0] sm:$0xff]  }
  0x68   : > { %v392_v37 = vunpack.c.h.bf16 %v264_v34  ;;  %v280_v28 = vld [vmem:[%s4180_s5 + $0x130] sm:$0xff]  }
  0x69   : > { %v634_v36 = vsel %vm459_vm0, %v389_v33, 0.0 }
  0x6a   : > { %v643_v41 = vsel %vm459_vm0, %v392_v37, 0.0 }
  0x6b   : > { %578 = vadd.xlane.f32.xlu1 %v577_v39  ;;  %575 = vadd.xlane.f32.xlu0 %v574_v40  ;;  %v391_v39 = vunpack.c.l.bf16 %v264_v34  ;;  %v266_v40 = vld [vmem:[%s4180_s5 + $0xf8] sm:$0xff]  }
  0x6c   : > { %v394_v44 = vunpack.c.h.bf16 %v266_v40 }
  0x6d   : > { %v640_v42 = vsel %vm459_vm0, %v391_v39, 0.0  ;;  %v408_v39 = vunpack.c.h.bf16 %v280_v28 }
  0x6e   : > { %v649_v47 = vsel %vm459_vm0, %v394_v44, 0.0 }
  0x6f   : > { %584 = vadd.xlane.f32.xlu1 %v583_v45  ;;  %581 = vadd.xlane.f32.xlu0 %v580_v46  ;;  %v393_v45 = vunpack.c.l.bf16 %v266_v40  ;;  %v4337_v46 = vld [vmem:[%s4180_s5 + $0x100] sm:$0xff]   ;;  %v407_v40 = vunpack.c.l.bf16 %v280_v28 }
  0x70   : > { %v396_v50 = vunpack.c.h.bf16 %v4337_v46 }
  0x71   : > { %v646_v49 = vsel %vm459_vm0, %v393_v45, 0.0 }
  0x72   : > { %v655_v54 = vsel %vm459_vm0, %v396_v50, 0.0 }
  0x73   : > { %590 = vadd.xlane.f32.xlu1 %v589_v51  ;;  %587 = vadd.xlane.f32.xlu0 %v586_v52  ;;  %v395_v51 = vunpack.c.l.bf16 %v4337_v46  ;;  %v4344_v52 = vld [vmem:[%s4180_s5 + $0x108] sm:$0xff]  }
  0x74   : > { %v398_v56 = vunpack.c.h.bf16 %v4344_v52 }
  0x75   : > { %v652_v55 = vsel %vm459_vm0, %v395_v51, 0.0 }
  0x76   : > { %v661_v59 = vsel %vm459_vm0, %v398_v56, 0.0 }
  0x77   : > { %596 = vadd.xlane.f32.xlu1 %v595_v57  ;;  %593 = vadd.xlane.f32.xlu0 %v592_v58  ;;  %v397_v57 = vunpack.c.l.bf16 %v4344_v52  ;;  %v4351_v58 = vld [vmem:[%s4180_s5 + $0x110] sm:$0xff]  }
  0x79   : > { %v658_v60 = vsel %vm459_vm0, %v397_v57, 0.0 }
  0x7b   : > { %602 = vadd.xlane.f32.xlu1 %v601_v62  ;;  %599 = vadd.xlane.f32.xlu0 %v598_v63  ;;  %v400_v62 = vunpack.c.h.bf16 %v4351_v58  ;;  %v399_v63 = vunpack.c.l.bf16 %v4351_v58 }
  0x7d   : > { %v667_v3 = vsel %vm459_vm0, %v400_v62, 0.0  ;;  %v688_v62 = vsel %vm459_vm0, %v407_v40, 0.0 }
  0x7f   : > { %608 = vadd.xlane.f32.xlu1 %v607_v5  ;;  %605 = vadd.xlane.f32.xlu0 %v604_v7  ;;  %v664_v5 = vsel %vm459_vm0, %v399_v63, 0.0  ;;  %v402_v7 = vunpack.c.h.bf16 %v274_v2 }
  0x83   : > { %614 = vadd.xlane.f32.xlu1 %v613_v11  ;;  %611 = vadd.xlane.f32.xlu0 %v610_v12  ;;  %v1901_v11 = vlaneseq  ;;  %v673_v12 = vsel %vm459_vm0, %v402_v7, 0.0 }
  0x85   : > { %v4364_v19 = vand.u32 127, %v1901_v11 }
  0x87   : > { %620 = vadd.xlane.f32.xlu1 %v619_v16  ;;  %617 = vadd.xlane.f32.xlu0 %v616_v18  ;;  %v403_v16 = vunpack.c.l.bf16 %v276_v9  ;;  %v278_v18 = vld [vmem:[%s4180_s5 + $0x128] sm:$0xff]   ;;  %v1921_v31 = vadd.s32 4294967272, %v4364_v19  ;;  %v1907_v33 = vadd.s32 4294967288, %v4364_v19  ;;  %v4397_v9 = vld [vmem:[%s4180_s5 + $0x140] sm:$0xff]  }
  0x88   : > { %v406_v25 = vunpack.c.h.bf16 %v278_v18  ;;  %v405_v26 = vunpack.c.l.bf16 %v278_v18 }
  0x8a   : > { %v682_v37 = vsel %vm459_vm0, %v405_v26, 0.0  ;;  %v4413_v26 = vld [vmem:[%s4180_s5 + $0x148] sm:$0xff]  }
  0x8b   : > { %626 = vadd.xlane.f32.xlu1 %v625_v23  ;;  %623 = vadd.xlane.f32.xlu0 %v622_v24  ;;  %v679_v23 = vsel %vm459_vm0, %v404_v14, 0.0  ;;  %v676_v24 = vsel %vm459_vm0, %v403_v16, 0.0 }
  0x8f   : > { %632 = vadd.xlane.f32.xlu1 %v631_v29  ;;  %629 = vadd.xlane.f32.xlu0 %v628_v30  ;;  %v4369_v29 = vshrl.u32 %v1901_v11, 7  ;;  %v1914_v30 = vadd.s32 4294967280, %v4364_v19 }
  0x91   : > { %v4381_v50 = vsub.s32 %v1921_v31, %v4369_v29  ;;  %v4385_v51 = vsub.s32 %v4364_v19, %v4369_v29 }
  0x93   : > { %638 = vadd.xlane.f32.xlu1 %v637_v35  ;;  %635 = vadd.xlane.f32.xlu0 %v634_v36  ;;  %v685_v36 = vsel %vm459_vm0, %v406_v25, 0.0  ;;  %v411_v25 = vunpack.c.l.bf16 %v4397_v9 }
  0x97   : > { %644 = vadd.xlane.f32.xlu1 %v643_v41  ;;  %641 = vadd.xlane.f32.xlu0 %v640_v42 }
  0x9b   : > { %650 = vadd.xlane.f32.xlu1 %v649_v47  ;;  %647 = vadd.xlane.f32.xlu0 %v646_v49  ;;  %v282_v47 = vld [vmem:[%s4180_s5 + $0x138] sm:$0xff]   ;;  %v4378_v49 = vsub.s32 %v1914_v30, %v4369_v29 }
  0x9c   : > { %v410_v63 = vunpack.c.h.bf16 %v282_v47  ;;  %v409_v2 = vunpack.c.l.bf16 %v282_v47 }
  0x9e   : > { %v697_v18 = vsel %vm459_vm0, %v410_v63, 0.0 }
  0x9f   : > { %656 = vadd.xlane.f32.xlu1 %v655_v54  ;;  %653 = vadd.xlane.f32.xlu0 %v652_v55  ;;  %v4388_v55 = vsub.s32 %v1907_v33, %v4369_v29 }
  0xa3   : > { %662 = vadd.xlane.f32.xlu1 %v661_v59  ;;  %659 = vadd.xlane.f32.xlu0 %v658_v60  ;;  %v691_v60 = vsel %vm459_vm0, %v408_v39, 0.0  ;;  %v4428_v39 = vld [vmem:[%s4180_s5 + $0x150] sm:$0xff]  }
  0xa4   : > { %5910 = vst [vmem:[#allocation7_spill] sm:$0xff] %v4428_v39  ;;  %v415_v47 = vunpack.c.l.bf16 %v4428_v39 }
  0xa7   : > { %668 = vadd.xlane.f32.xlu1 %v667_v3  ;;  %665 = vadd.xlane.f32.xlu0 %v664_v5 }
  0xab   : > { %674 = vadd.xlane.f32.xlu1 %v673_v12  ;;  %671 = vadd.xlane.f32.xlu0 %v670_v13 }
  0xac   : > { %v468_v20 = vpop.xlane.xlu1 %467  ;;  %v462_v21 = vpop.xlane.xlu0 %461 }
  0xad   : > { %v846_v41 = vmul.f32 0.015625, %v468_v20  ;;  %v844_v42 = vmul.f32 0.015625, %v462_v21  ;;  %v412_v20 = vunpack.c.h.bf16 %v4397_v9 }
  0xaf   : > { %680 = vadd.xlane.f32.xlu1 %v679_v23  ;;  %677 = vadd.xlane.f32.xlu0 %v676_v24  ;;  %v694_v24 = vsel %vm459_vm0, %v409_v2, 0.0  ;;  %v712_v2 = vsel %vm459_vm0, %v415_v47, 0.0 }
  0xb0   : > { %v471_v34 = vpop.xlane.xlu1 %470  ;;  %v465_v35 = vpop.xlane.xlu0 %464 }
  0xb1   : > { %v847_v44 = vmul.f32 0.015625, %v471_v34  ;;  %v845_v45 = vmul.f32 0.015625, %v465_v35  ;;  %v703_v34 = vsel %vm459_vm0, %v412_v20, 0.0  ;;  %v414_v35 = vunpack.c.h.bf16 %v4413_v26  ;;  %v294_v20 = vld [vmem:[%s4180_s5 + $0x168] sm:$0xff]  }
  0xb3   : > { %v973_v54 = vpack.c.bf16 %v847_v44, %v846_v41  ;;  %v972_v56 = vpack.c.bf16 %v845_v45, %v844_v42  ;;  %686 = vadd.xlane.f32.xlu1 %v685_v36  ;;  %683 = vadd.xlane.f32.xlu0 %v682_v37  ;;  %v700_v36 = vsel %vm459_vm0, %v411_v25, 0.0  ;;  %v413_v37 = vunpack.c.l.bf16 %v4413_v26 }
  0xb4   : > { %v4390_v57 = vpop.xlane.xlu1 %476  ;;  %v4392_v59 = vpop.xlane.xlu0 %473  ;;  %v709_v42 = vsel %vm459_vm0, %v414_v35, 0.0  ;;  %v416_v44 = vunpack.c.h.bf16 %v4428_v39  ;;  %v422_v25 = vunpack.c.h.bf16 %v294_v20  ;;  %v296_v35 = vld [vmem:[%s4180_s5 + $0x170] sm:$0xff]  }
  0xb5   : > { %v2735_v3 = vunpack.c.l.b16 %v973_v54  ;;  %v2736_v5 = vunpack.c.h.b16 %v973_v54  ;;  %v2733_v7 = vunpack.c.l.b16 %v972_v56  ;;  %v2734_v8 = vunpack.c.h.b16 %v972_v56  ;;  %v290_v54 = vld [vmem:[%s4180_s5 + $0x158] sm:$0xff]  }
  0xb6   : > { %v706_v45 = vsel %vm459_vm0, %v413_v37, 0.0  ;;  %v418_v63 = vunpack.c.h.bf16 %v290_v54  ;;  %v423_v47 = vunpack.c.l.bf16 %v296_v35 }
  0xb7   : > { %v2873_v11 = vrot.slane %v2735_v3, %v4378_v49  ;;  %v2864_v12 = vrot.slane %v2733_v7, %v4385_v51  ;;  %v2868_v13 = vrot.slane %v2734_v8, %v4388_v55  ;;  %692 = vadd.xlane.f32.xlu1 %v691_v60  ;;  %689 = vadd.xlane.f32.xlu0 %v688_v62  ;;  %v715_v62 = vsel %vm459_vm0, %v416_v44, 0.0 }
  0xb8   : > { %v4402_v14 = vpop.xlane.xlu1 %482  ;;  %v4404_v16 = vpop.xlane.xlu0 %479  ;;  %v2878_v21 = vrot.slane %v2736_v5, %v4381_v50  ;;  %v417_v3 = vunpack.c.l.bf16 %v290_v54  ;;  %v292_v5 = vld [vmem:[%s4180_s5 + $0x160] sm:$0xff]   ;;  %v424_v44 = vunpack.c.h.bf16 %v296_v35  ;;  %v298_v54 = vld [vmem:[%s4180_s5 + $0x178] sm:$0xff]  }
  0xb9   : > { %v2869_v23 = vsel %vm1912_vm1, %v2868_v13, %v2864_v12  ;;  %v420_v12 = vunpack.c.h.bf16 %v292_v5 }
  0xba   : > { %v2874_v28 = vsel %vm1919_vm2, %v2873_v11, %v2869_v23  ;;  %v721_v11 = vsel %vm459_vm0, %v418_v63, 0.0  ;;  %v718_v13 = vsel %vm459_vm0, %v417_v3, 0.0  ;;  %v426_v3 = vunpack.c.h.bf16 %v298_v54 }
  0xbb   : > { %v4417_v30 = vsel %vm1926_vm3, %v2878_v21, %v2874_v28  ;;  %698 = vadd.xlane.f32.xlu1 %v697_v18  ;;  %695 = vadd.xlane.f32.xlu0 %v694_v24  ;;  %v419_v18 = vunpack.c.l.bf16 %v292_v5  ;;  %v727_v24 = vsel %vm459_vm0, %v420_v12, 0.0  ;;  %v736_v5 = vsel %vm459_vm0, %v423_v47, 0.0 }
  0xbc   : > { %v4419_v31 = vpop.xlane.xlu1 %488  ;;  %v4421_v33 = vpop.xlane.xlu0 %485  ;;  %v1403_v47 = vsel %vm459_vm0, %v4224_v43, 4286644096  ;;  %v4512_v43 = vld [vmem:[%s4180_s5 + $0x180] sm:$0xff]  }
  0xbd   : > { %v724_v28 = vsel %vm459_vm0, %v419_v18, 0.0  ;;  %v745_v18 = vsel %vm459_vm0, %v426_v3, 0.0 }
  0xbf   : > { %704 = vadd.xlane.f32.xlu1 %v703_v34  ;;  %701 = vadd.xlane.f32.xlu0 %v700_v36  ;;  %v421_v34 = vunpack.c.l.bf16 %v294_v20 }
  0xc0   : > { %v4430_v40 = vpop.xlane.xlu1 %494  ;;  %v4432_v41 = vpop.xlane.xlu0 %491 }
  0xc3   : > { %710 = vadd.xlane.f32.xlu1 %v709_v42  ;;  %707 = vadd.xlane.f32.xlu0 %v706_v45  ;;  %v733_v42 = vsel %vm459_vm0, %v422_v25, 0.0  ;;  %v730_v45 = vsel %vm459_vm0, %v421_v34, 0.0  ;;  %v1358_v34 = vsel %vm459_vm0, %v4186_v1, 4286644096 }
  0xc4   : > { %v4439_v56 = vpop.xlane.xlu1 %500  ;;  %v4441_v60 = vpop.xlane.xlu0 %497 }
  0xc7   : > { %716 = vadd.xlane.f32.xlu1 %v715_v62  ;;  %713 = vadd.xlane.f32.xlu0 %v712_v2  ;;  %v739_v2 = vsel %vm459_vm0, %v424_v44, 0.0 }
  0xc8   : > { %v4446_v7 = vpop.xlane.xlu1 %506  ;;  %v4448_v8 = vpop.xlane.xlu0 %503 }
  0xcb   : > { %722 = vadd.xlane.f32.xlu1 %v721_v11  ;;  %719 = vadd.xlane.f32.xlu0 %v718_v13  ;;  %v425_v11 = vunpack.c.l.bf16 %v298_v54 }
  0xcc   : > { %v4453_v21 = vpop.xlane.xlu1 %512  ;;  %v4455_v23 = vpop.xlane.xlu0 %509 }
  0xcd   : > { %v742_v20 = vsel %vm459_vm0, %v425_v11, 0.0  ;;  %v1438_v11 = vsel %vm459_vm0, %v4257_v17, 4286644096  ;;  %v1942_v17 = vadd.s32 4294967248, %v4364_v19 }
  0xcf   : > { %728 = vadd.xlane.f32.xlu1 %v727_v24  ;;  %725 = vadd.xlane.f32.xlu0 %v724_v28  ;;  %v1398_v28 = vsel %vm459_vm0, %v4217_v38, 4286644096  ;;  %v1363_v38 = vsel %vm459_vm0, %v4183_v0, 4286644096  ;;  %v1928_v0 = vadd.s32 4294967264, %v4364_v19 }
  0xd0   : > { %v4460_v36 = vpop.xlane.xlu1 %518  ;;  %v4462_v37 = vpop.xlane.xlu0 %515 }
  0xd3   : > { %734 = vadd.xlane.f32.xlu1 %v733_v42  ;;  %731 = vadd.xlane.f32.xlu0 %v730_v45 }
  0xd4   : > { %v4467_v62 = vpop.xlane.xlu1 %524  ;;  %v4469_v63 = vpop.xlane.xlu0 %521 }
  0xd7   : > { %740 = vadd.xlane.f32.xlu1 %v739_v2  ;;  %737 = vadd.xlane.f32.xlu0 %v736_v5  ;;  %v1443_v5 = vsel %vm459_vm0, %v4264_v22, 4286644096  ;;  %v1935_v22 = vadd.s32 4294967256, %v4364_v19 }
  0xd8   : > { %v4473_v12 = vpop.xlane.xlu1 %530  ;;  %v4475_v13 = vpop.xlane.xlu0 %527 }
  0xdb   : > { %746 = vadd.xlane.f32.xlu1 %v745_v18  ;;  %743 = vadd.xlane.f32.xlu0 %v742_v20 }
  0xdc   : > { %v4479_v24 = vpop.xlane.xlu1 %536  ;;  %v4481_v25 = vpop.xlane.xlu0 %533 }
  0xdf   : > { %1400 = vmax.xlane.bf16.xlu1 %v1398_v28  ;;  %1360 = vmax.xlane.bf16.xlu0 %v1358_v34  ;;  %v427_v28 = vunpack.c.l.bf16 %v4512_v43  ;;  %v849_v34 = vmul.f32 0.015625, %v4390_v57 }
  0xe0   : > { %v4487_v35 = vpop.xlane.xlu1 %542  ;;  %v4489_v42 = vpop.xlane.xlu0 %539 }
  0xe1   : > { %5911 = vst [vmem:[#allocation8_spill] sm:$0xff] %v4487_v35  ;;  %5912 = vst [vmem:[#allocation9_spill] sm:$0xff] %v4489_v42  ;;  %v853_v42 = vmul.f32 0.015625, %v4419_v31 }
  0xe4   : > { %v4491_v44 = vpop.xlane.xlu1 %548  ;;  %v4493_v45 = vpop.xlane.xlu0 %545 }
  0xe5   : > { %5913 = vst [vmem:[#allocation10_spill] sm:$0xff] %v4491_v44  ;;  %5914 = vst [vmem:[#allocation11_spill] sm:$0xff] %v4493_v45  ;;  %v1977_v45 = vadd.s32 4294967208, %v4364_v19  ;;  %v1478_v44 = vsel %vm459_vm0, %v4297_v61, 4286644096 }
  0xe7   : > { %1405 = vmax.xlane.bf16.xlu1 %v1403_v47  ;;  %1365 = vmax.xlane.bf16.xlu0 %v1363_v38  ;;  %v848_v47 = vmul.f32 0.015625, %v4392_v59  ;;  %v4525_v38 = vsub.s32 %v1928_v0, %v4369_v29  ;;  %v748_v59 = vsel %vm459_vm0, %v427_v28, 0.0  ;;  %v1984_v0 = vadd.s32 4294967200, %v4364_v19 }
  0xe8   : > { %v4499_v1 = vpop.xlane.xlu1 %554  ;;  %v4501_v54 = vpop.xlane.xlu0 %551  ;;  %v1998_v28 = vadd.s32 4294967184, %v4364_v19 }
  0xe9   : > { %5915 = vst [vmem:[#allocation12_spill] sm:$0xff] %v4499_v1  ;;  %5916 = vst [vmem:[#allocation13_spill] sm:$0xff] %v4501_v54  ;;  %v1963_v54 = vadd.s32 4294967224, %v4364_v19  ;;  %v1970_v1 = vadd.s32 4294967216, %v4364_v19  ;;  %v974_v39 = vpack.c.bf16 %v849_v34, %v848_v47  ;;  %v851_v34 = vmul.f32 0.015625, %v4402_v14 }
  0xea   : > { %v1368_v14 = vsel %vm459_vm0, %v4193_v6, 4286644096  ;;  %v4583_v6 = vsub.s32 %v1998_v28, %v4369_v29 }
  0xeb   : > { %v2738_v35 = vunpack.c.h.b16 %v974_v39 }
  0xec   : > { %v4503_v2 = vpop.xlane.xlu1 %560  ;;  %v4505_v3 = vpop.xlane.xlu0 %557  ;;  %5926 = vst [vmem:[#allocation23_spill] sm:$0xff] %v4583_v6  ;;  %v4600_v6 = vld [vmem:[%s4180_s5 + $0x1c8] sm:$0xff]  }
  0xed   : > { %5917 = vst [vmem:[#allocation14_spill] sm:$0xff] %v4503_v2  ;;  %5918 = vst [vmem:[#allocation15_spill] sm:$0xff] %v4505_v3 }
  0xef   : > { %1445 = vmax.xlane.bf16.xlu1 %v1443_v5  ;;  %1440 = vmax.xlane.bf16.xlu0 %v1438_v11  ;;  %v1949_v5 = vadd.s32 4294967240, %v4364_v19  ;;  %v1956_v11 = vadd.s32 4294967232, %v4364_v19 }
  0xf0   : > { %v4515_v18 = vpop.xlane.xlu1 %566  ;;  %v4517_v20 = vpop.xlane.xlu0 %563 }
  0xf1   : > { %5919 = vst [vmem:[#allocation16_spill] sm:$0xff] %v4515_v18  ;;  %5920 = vst [vmem:[#allocation17_spill] sm:$0xff] %v4517_v20  ;;  %v4541_v20 = vsub.s32 %v1935_v22, %v4369_v29  ;;  %v4544_v18 = vsub.s32 %v1942_v17, %v4369_v29  ;;  %v4550_v47 = vsub.s32 %v1949_v5, %v4369_v29  ;;  %v2005_v17 = vadd.s32 4294967176, %v4364_v19  ;;  %v4568_v5 = vld [vmem:[%s4180_s5 + $0x188] sm:$0xff]  }
  0xf2   : > { %v4554_v61 = vsub.s32 %v1956_v11, %v4369_v29  ;;  %v4557_v22 = vsub.s32 %v1963_v54, %v4369_v29  ;;  %5925 = vst [vmem:[#allocation22_spill] sm:$0xff] %v4568_v5  ;;  %v2737_v11 = vunpack.c.l.b16 %v974_v39  ;;  %v4574_v54 = vsub.s32 %v1977_v45, %v4369_v29 }
  0xf3   : > { %v429_v45 = vunpack.c.l.bf16 %v4568_v5  ;;  %v430_v39 = vunpack.c.h.bf16 %v4568_v5 }
  0xf4   : > { %v4531_v15 = vpop.xlane.xlu1 %572  ;;  %v4533_v57 = vpop.xlane.xlu0 %569 }
  0xf5   : > { %5921 = vst [vmem:[#allocation18_spill] sm:$0xff] %v4531_v15  ;;  %5922 = vst [vmem:[#allocation19_spill] sm:$0xff] %v4533_v57  ;;  %v1991_v57 = vadd.s32 4294967192, %v4364_v19  ;;  %v850_v15 = vmul.f32 0.015625, %v4404_v16  ;;  %v428_v16 = vunpack.c.h.bf16 %v4512_v43  ;;  %v4577_v19 = vsub.s32 %v1984_v0, %v4369_v29 }
  0xf6   : > { %v4592_v0 = vsub.s32 %v2005_v17, %v4369_v29 }
  0xf7   : > { %749 = vadd.xlane.f32.xlu1 %v748_v59  ;;  %1480 = vmax.xlane.bf16.xlu0 %v1478_v44  ;;  %v4571_v59 = vsub.s32 %v1970_v1, %v4369_v29  ;;  %v4580_v44 = vsub.s32 %v1991_v57, %v4369_v29  ;;  %v852_v1 = vmul.f32 0.015625, %v4421_v33  ;;  %v751_v28 = vsel %vm459_vm0, %v428_v16, 0.0 }
  0xf8   : > { %v4560_v3 = vpop.xlane.xlu1 %578  ;;  %v4562_v2 = vpop.xlane.xlu0 %575  ;;  %5927 = vst [vmem:[#allocation24_spill] sm:$0xff] %v4592_v0  ;;  %v1408_v29 = vsel %vm459_vm0, %v4231_v48, 4286644096  ;;  %v754_v16 = vsel %vm459_vm0, %v429_v45, 0.0  ;;  %v854_v0 = vmul.f32 0.015625, %v4432_v41 }
  0xf9   : > { %5923 = vst [vmem:[#allocation20_spill] sm:$0xff] %v4560_v3  ;;  %5924 = vst [vmem:[#allocation21_spill] sm:$0xff] %v4562_v2  ;;  %v4586_v2 = vld [vmem:[%s4180_s5 + $0x1c0] sm:$0xff]   ;;  %v975_v3 = vpack.c.bf16 %v851_v34, %v850_v15  ;;  %v2883_v15 = vrot.slane %v2737_v11, %v4525_v38  ;;  %v1483_v34 = vsel %vm459_vm0, %v4304_v4, 4286644096  ;;  %v2888_v11 = vrot.slane %v2738_v35, %v4541_v20 }
  0xfa   : > { %v443_v31 = vunpack.c.l.bf16 %v4586_v2  ;;  %v444_v33 = vunpack.c.h.bf16 %v4586_v2  ;;  %v1518_v4 = vsel %vm459_vm0, %v4337_v46, 4286644096  ;;  %v4634_v45 = vsel %vm459_vm0, %v4344_v52, 4286644096 }
  0xfb   : > { %1370 = vmax.xlane.bf16.xlu1 %v1368_v14  ;;  %v2739_v17 = vunpack.c.l.b16 %v975_v3  ;;  %v976_v14 = vpack.c.bf16 %v853_v42, %v852_v1  ;;  %v2884_v42 = vsel %vm1933_vm4, %v2883_v15, %v4417_v30  ;;  %v2740_v41 = vunpack.c.h.b16 %v975_v3 }
  0xfc   : > { %v4594_v57 = vpop.xlane.xlu1 %584  ;;  %v4596_v32 = vpop.xlane.xlu0 %581  ;;  %v4624_v1 = vsel %vm459_vm0, %v443_v31, 0.0  ;;  %v4627_v35 = vsel %vm459_vm0, %v444_v33, 0.0  ;;  %v4638_v46 = vsel %vm459_vm0, %v4271_v27, 4286644096  ;;  %v4009_v31 = vld [vmem:[%s4180_s5 + $0x18] sm:$0xff]   ;;  %v2889_v33 = vsel %vm1940_vm5, %v2888_v11, %v2884_v42 }
  0xfd   : > { %5928 = vst [vmem:[#allocation25_spill] sm:$0xff] %v4594_v57  ;;  %5929 = vst [vmem:[#allocation26_spill] sm:$0xff] %v4596_v32  ;;  %v445_v32 = vunpack.c.l.bf16 %v4600_v6  ;;  %v855_v57 = vmul.f32 0.015625, %v4430_v40  ;;  %v4630_v40 = vsel %vm459_vm0, %v430_v39, 0.0  ;;  %v2893_v30 = vrot.slane %v2739_v17, %v4544_v18 }
  0xfe   : > { %v446_v27 = vunpack.c.h.bf16 %v4600_v6  ;;  %v857_v17 = vmul.f32 0.015625, %v4439_v56  ;;  %v2898_v11 = vrot.slane %v2740_v41, %v4550_v47  ;;  %v4662_v56 = vsel %vm459_vm0, %v4397_v9, 4286644096 }
  0xff   : > { %752 = vadd.xlane.f32.xlu0 %v751_v28  ;;  %v2741_v28 = vunpack.c.l.b16 %v976_v14  ;;  %v4642_v15 = vsel %vm459_vm0, %v445_v32, 0.0  ;;  %v977_v3 = vpack.c.bf16 %v855_v57, %v854_v0  ;;  %v861_v32 = vmul.f32 0.015625, %v4453_v21 }
 0x100   : > { %v4615_v48 = vpop.xlane.xlu1 %590  ;;  %v4617_v5 = vpop.xlane.xlu0 %587  ;;  %v2742_v0 = vunpack.c.h.b16 %v976_v14  ;;  %v863_v57 = vmul.f32 0.015625, %v4460_v36  ;;  %v2894_v42 = vsel %vm5899_vm6, %v2893_v30, %v2889_v33  ;;  %v4672_v14 = vsel %vm459_vm0, %v4009_v31, 4286644096 }
 0x101   : > { %5930 = vst [vmem:[#allocation27_spill] sm:$0xff] %v4617_v5  ;;  %v860_v5 = vmul.f32 0.015625, %v4455_v23  ;;  %v2743_v21 = vunpack.c.l.b16 %v977_v3  ;;  %v4675_v41 = vsel %vm459_vm0, %v446_v27, 0.0  ;;  %v4679_v9 = vsel %vm459_vm0, %v4238_v53, 4286644096 }
 0x102   : > { %v2899_v30 = vsel %vm5900_vm7, %v2898_v11, %v2894_v42  ;;  %v4689_v27 = vsel %vm459_vm0, %v4311_v10, 4286644096  ;;  %v2744_v53 = vunpack.c.h.b16 %v977_v3 }
 0x103   : > { %1410 = vmax.xlane.bf16.xlu1 %v1408_v29  ;;  %1485 = vmax.xlane.bf16.xlu0 %v1483_v34  ;;  %v856_v29 = vmul.f32 0.015625, %v4441_v60  ;;  %v862_v34 = vmul.f32 0.015625, %v4462_v37  ;;  %v4665_v60 = vld [vmem:[%s4180_s5 + $0x190] sm:$0xff]   ;;  %v980_v37 = vpack.c.bf16 %v861_v32, %v860_v5  ;;  %v864_v5 = vmul.f32 0.015625, %v4469_v63 }
 0x104   : > { %v4646_v52 = vpop.xlane.xlu1 %596  ;;  %v4648_v39 = vpop.xlane.xlu0 %593  ;;  %5933 = vst [vmem:[#allocation30_spill] sm:$0xff] %v4665_v60  ;;  %v431_v3 = vunpack.c.l.bf16 %v4665_v60 }
 0x105   : > { %5931 = vst [vmem:[#allocation28_spill] sm:$0xff] %v4646_v52  ;;  %5932 = vst [vmem:[#allocation29_spill] sm:$0xff] %v4648_v39  ;;  %v2903_v39 = vrot.slane %v2741_v28, %v4554_v61  ;;  %v978_v36 = vpack.c.bf16 %v857_v17, %v856_v29  ;;  %v2908_v28 = vrot.slane %v2742_v0, %v4557_v22  ;;  %v865_v17 = vmul.f32 0.015625, %v4467_v62 }
 0x106   : > { %v981_v33 = vpack.c.bf16 %v863_v57, %v862_v34  ;;  %v2913_v29 = vrot.slane %v2743_v21, %v4571_v59  ;;  %v4702_v62 = vsel %vm459_vm0, %v4413_v26, 4286644096  ;;  %v2749_v10 = vunpack.c.l.b16 %v980_v37 }
 0x107   : > { %v2904_v31 = vsel %vm1961_vm8, %v2903_v39, %v2899_v30  ;;  %v4698_v39 = vsel %vm459_vm0, %v4512_v43, 4286644096  ;;  %v2745_v63 = vunpack.c.l.b16 %v978_v36  ;;  %v859_v0 = vmul.f32 0.015625, %v4446_v7 }
 0x108   : > { %v4667_v52 = vpop.xlane.xlu1 %602  ;;  %v4669_v23 = vpop.xlane.xlu0 %599  ;;  %v2751_v57 = vunpack.c.l.b16 %v981_v33  ;;  %v858_v43 = vmul.f32 0.015625, %v4448_v8  ;;  %v982_v42 = vpack.c.bf16 %v865_v17, %v864_v5  ;;  %v867_v26 = vmul.f32 0.015625, %v4473_v12 }
 0x109   : > { %5934 = vst [vmem:[#allocation31_spill] sm:$0xff] %v4667_v52  ;;  %5935 = vst [vmem:[#allocation32_spill] sm:$0xff] %v4669_v23  ;;  %v432_v23 = vunpack.c.h.bf16 %v4665_v60  ;;  %v866_v21 = vmul.f32 0.015625, %v4475_v13  ;;  %v2918_v30 = vrot.slane %v2744_v53, %v4574_v54  ;;  %v2943_v8 = vrot.slane %v2749_v10, %v4385_v51 }
 0x10a   : > { %v2752_v12 = vunpack.c.h.b16 %v981_v33  ;;  %v2952_v13 = vrot.slane %v2751_v57, %v4378_v49  ;;  %v979_v5 = vpack.c.bf16 %v859_v0, %v858_v43  ;;  %v2753_v53 = vunpack.c.l.b16 %v982_v42  ;;  %v5940_v43 = vld [vmem:[#allocation5_spill] sm:$0xff] }
 0x10b   : > { %755 = vadd.xlane.f32.xlu1 %v754_v16  ;;  %1520 = vmax.xlane.bf16.xlu0 %v1518_v4  ;;  %v2750_v16 = vunpack.c.h.b16 %v980_v37  ;;  %v2909_v4 = vsel %vm1968_vm9, %v2908_v28, %v2904_v31  ;;  %v4708_v34 = vsel %vm459_vm0, %v432_v23, 0.0  ;;  %v2746_v28 = vunpack.c.h.b16 %v978_v36 }
 0x10c   : > { %v4692_v32 = vpop.xlane.xlu1 %608  ;;  %v4694_v11 = vpop.xlane.xlu0 %605  ;;  %5936 = vst [vmem:[#allocation33_spill] sm:$0xff] %v4708_v34  ;;  %v2914_v37 = vsel %vm5901_vm10, %v2913_v29, %v2909_v4  ;;  %v2923_v23 = vrot.slane %v2745_v63, %v4577_v19  ;;  %v983_v36 = vpack.c.bf16 %v867_v26, %v866_v21  ;;  %v869_v10 = vmul.f32 0.015625, %v4479_v24  ;;  %v4745_v24 = vld [vmem:[%s4180_s5 + $0x1d0] sm:$0xff]   ;;  %v5957_v34 = vld [vmem:[#allocation18_spill] sm:$0xff] }
 0x10d   : > { %v2947_v17 = vrot.slane %v2750_v16, %v4388_v55  ;;  %v2919_v29 = vsel %vm5903_vm11, %v2918_v30, %v2914_v37  ;;  %v2928_v63 = vrot.slane %v2746_v28, %v4580_v44  ;;  %v868_v16 = vmul.f32 0.015625, %v4481_v25  ;;  %5939 = vst [vmem:[#allocation36_spill] sm:$0xff] %v4745_v24 }
 0x10e   : > { %v2924_v4 = vsel %vm5902_vm12, %v2923_v23, %v2919_v29  ;;  %v4742_v57 = vsel %vm459_vm0, %v4351_v58, 4286644096  ;;  %v4750_v26 = vsel %vm459_vm0, %v5940_v43, 4286644096  ;;  %v4754_v21 = vsel %vm459_vm0, %v4586_v2, 4286644096 }
 0x10f   : > { %797 = vadd.xlane.f32.xlu1 %v4624_v1  ;;  %v4725_v1 = vsel %vm459_vm0, %v431_v3, 0.0  ;;  %v2948_v0 = vsel %vm1912_vm1, %v2947_v17, %v2943_v8  ;;  %5938 = vst [vmem:[#allocation35_spill] sm:$0xff] %v4742_v57  ;;  %5941 = vst [vmem:[#allocation5_spill] sm:$0xff] %v4750_v26  ;;  %v2747_v37 = vunpack.c.l.b16 %v979_v5  ;;  %v2962_v30 = vrot.slane %v2753_v53, %v4525_v38  ;;  %v5943_v58 = vld [vmem:[#allocation22_spill] sm:$0xff]  ;;  %v5945_v29 = vld [vmem:[#allocation8_spill] sm:$0xff] }
 0x110   : > { %v4716_v31 = vpop.xlane.xlu1 %614  ;;  %v4718_v7 = vpop.xlane.xlu0 %611  ;;  %5937 = vst [vmem:[#allocation34_spill] sm:$0xff] %v4725_v1  ;;  %v2953_v25 = vsel %vm1919_vm2, %v2952_v13, %v2948_v0  ;;  %5942 = vst [vmem:[#allocation37_spill] sm:$0xff] %v4754_v21  ;;  %v2755_v28 = vunpack.c.l.b16 %v983_v36  ;;  %v4760_v23 = vsel %vm459_vm0, %v5943_v58, 4286644096  ;;  %v2748_v8 = vunpack.c.h.b16 %v979_v5  ;;  %v5946_v0 = vld [vmem:[#allocation9_spill] sm:$0xff] }
 0x111   : > { %5944 = vst [vmem:[#allocation22_spill] sm:$0xff] %v4760_v23  ;;  %v984_v17 = vpack.c.bf16 %v869_v10, %v868_v16  ;;  %v448_v13 = vunpack.c.h.bf16 %v4745_v24  ;;  %v870_v43 = vmul.f32 0.015625, %v5946_v0  ;;  %v447_v58 = vunpack.c.l.bf16 %v4745_v24  ;;  %v5947_v10 = vld [vmem:[#allocation14_spill] sm:$0xff]  ;;  %v5948_v16 = vld [vmem:[#allocation15_spill] sm:$0xff]  ;;  %v5952_v24 = vld [vmem:[#allocation24_spill] sm:$0xff] }
 0x112   : > { %v2972_v23 = vrot.slane %v2755_v28, %v4544_v18  ;;  %v5951_v0 = vld [vmem:[#allocation23_spill] sm:$0xff]  ;;  %v4782_v57 = vrot.slane %v2748_v8, %v5952_v24 }
 0x113   : > { %800 = vadd.xlane.f32.xlu1 %v4627_v35  ;;  %758 = vadd.xlane.f32.xlu0 %v4630_v40  ;;  %v2957_v35 = vrot.slane %v2752_v12, %v4381_v50  ;;  %v2754_v40 = vunpack.c.h.b16 %v982_v42  ;;  %v2929_v42 = vsel %vm1996_vm13, %v2928_v63, %v2924_v4  ;;  %v2756_v63 = vunpack.c.h.b16 %v983_v36 }
 0x114   : > { %v4733_v33 = vpop.xlane.xlu1 %620  ;;  %v4735_v3 = vpop.xlane.xlu0 %617  ;;  %v876_v4 = vmul.f32 0.015625, %v5948_v16  ;;  %v2933_v26 = vrot.slane %v2747_v37, %v5951_v0  ;;  %5953 = vst [vmem:[#allocation8_spill] sm:$0xff] %v4782_v57  ;;  %v2757_v36 = vunpack.c.l.b16 %v984_v17  ;;  %v4010_v16 = vld [vmem:[%s4180_s5 + $0x60] sm:$0xff]   ;;  %v4793_v28 = vsel %vm459_vm0, %v447_v58, 0.0  ;;  %v4799_v57 = vld [vmem:[%s4180_s5 + $0x198] sm:$0xff]  }
 0x115   : > { %v2958_v53 = vsel %vm1926_vm3, %v2957_v35, %v2953_v25  ;;  %v2967_v5 = vrot.slane %v2754_v40, %v4541_v20  ;;  %v5949_v35 = vld [vmem:[#allocation16_spill] sm:$0xff]  ;;  %5955 = vst [vmem:[#allocation14_spill] sm:$0xff] %v4793_v28  ;;  %v2977_v37 = vrot.slane %v2756_v63, %v4550_v47  ;;  %v2758_v8 = vunpack.c.h.b16 %v984_v17  ;;  %5956 = vst [vmem:[#allocation15_spill] sm:$0xff] %v4799_v57 }
 0x116   : > { %v2963_v60 = vsel %vm1933_vm4, %v2962_v30, %v2958_v53  ;;  %v879_v25 = vmul.f32 0.015625, %v5949_v35  ;;  %v4790_v30 = vsel %vm459_vm0, %v448_v13, 0.0  ;;  %v4011_v53 = vld [vmem:[%s4180_s5 + $0x20] sm:$0xff]   ;;  %v4806_v58 = vsel %vm2003_vm14, %v2933_v26, %v2929_v42 }
 0x117   : > { %1525 = vmax.xlane.bf16.xlu1 %v4634_v45  ;;  %1450 = vmax.xlane.bf16.xlu0 %v4638_v46  ;;  %v871_v45 = vmul.f32 0.015625, %v5945_v29  ;;  %v877_v46 = vmul.f32 0.015625, %v5947_v10  ;;  %v5950_v29 = vld [vmem:[#allocation17_spill] sm:$0xff]  ;;  %5954 = vst [vmem:[#allocation9_spill] sm:$0xff] %v4790_v30  ;;  %v2968_v35 = vsel %vm1940_vm5, %v2967_v5, %v2963_v60  ;;  %5959 = vst [vmem:[#allocation16_spill] sm:$0xff] %v4806_v58 }
 0x118   : > { %v4764_v12 = vpop.xlane.xlu1 %626  ;;  %v4766_v2 = vpop.xlane.xlu0 %623  ;;  %v878_v21 = vmul.f32 0.015625, %v5950_v29  ;;  %v2973_v24 = vsel %vm5899_vm6, %v2972_v23, %v2968_v35  ;;  %v2982_v60 = vrot.slane %v2757_v36, %v4554_v61  ;;  %v4815_v23 = vsel %vm459_vm0, %v4010_v16, 4286644096 }
 0x119   : > { %v985_v52 = vpack.c.bf16 %v871_v45, %v870_v43  ;;  %v988_v29 = vpack.c.bf16 %v877_v46, %v876_v4  ;;  %v881_v45 = vmul.f32 0.015625, %v5957_v34  ;;  %v5958_v43 = vld [vmem:[#allocation19_spill] sm:$0xff]  ;;  %5960 = vst [vmem:[#allocation17_spill] sm:$0xff] %v4815_v23  ;;  %v4818_v34 = vsel %vm459_vm0, %v4011_v53, 4286644096  ;;  %v5964_v53 = vld [vmem:[#allocation20_spill] sm:$0xff] }
 0x11a   : > { %v989_v1 = vpack.c.bf16 %v879_v25, %v878_v21  ;;  %v880_v13 = vmul.f32 0.015625, %v5958_v43  ;;  %5961 = vst [vmem:[#allocation23_spill] sm:$0xff] %v4818_v34  ;;  %v2978_v26 = vsel %vm5900_vm7, %v2977_v37, %v2973_v24  ;;  %v2987_v42 = vrot.slane %v2758_v8, %v4557_v22  ;;  %v5963_v25 = vld [vmem:[#allocation11_spill] sm:$0xff]  ;;  %v5965_v34 = vld [vmem:[#allocation21_spill] sm:$0xff] }
 0x11b   : > { %v2759_v21 = vunpack.c.l.b16 %v985_v52  ;;  %v2765_v63 = vunpack.c.l.b16 %v988_v29  ;;  %v2766_v46 = vunpack.c.h.b16 %v988_v29  ;;  %v872_v36 = vmul.f32 0.015625, %v5963_v25  ;;  %v5967_v37 = vld [vmem:[#allocation7_spill] sm:$0xff] }
 0x11c   : > { %v4784_v40 = vpop.xlane.xlu1 %632  ;;  %v4786_v10 = vpop.xlane.xlu0 %629  ;;  %v2767_v35 = vunpack.c.l.b16 %v989_v1  ;;  %v990_v43 = vpack.c.bf16 %v881_v45, %v880_v13  ;;  %v2983_v16 = vsel %vm1961_vm8, %v2982_v60, %v2978_v26  ;;  %v883_v58 = vmul.f32 0.015625, %v5964_v53  ;;  %v5969_v45 = vld [vmem:[#allocation6_spill] sm:$0xff] }
 0x11d   : > { %v882_v23 = vmul.f32 0.015625, %v5965_v34  ;;  %v4835_v8 = vsel %vm459_vm0, %v5967_v37, 4286644096  ;;  %v2760_v29 = vunpack.c.h.b16 %v985_v52  ;;  %v3022_v13 = vrot.slane %v2765_v63, %v4385_v51 }
 0x11e   : > { %5968 = vst [vmem:[#allocation19_spill] sm:$0xff] %v4835_v8  ;;  %v3026_v60 = vrot.slane %v2766_v46, %v4388_v55  ;;  %v2768_v34 = vunpack.c.h.b16 %v989_v1  ;;  %v2988_v25 = vsel %vm1968_vm9, %v2987_v42, %v2983_v16  ;;  %v3031_v52 = vrot.slane %v2767_v35, %v4378_v49  ;;  %v5972_v8 = vld [vmem:[#allocation25_spill] sm:$0xff]  ;;  %v4012_v1 = vld [vmem:[%s4180_s5 + $0xa0] sm:$0xff]  }
 0x11f   : > { %803 = vadd.xlane.f32.xlu1 %v4642_v15  ;;  %1560 = vmax.xlane.bf16.xlu0 %v4662_v56  ;;  %v433_v15 = vunpack.c.l.bf16 %v4799_v57  ;;  %v5962_v56 = vld [vmem:[#allocation10_spill] sm:$0xff]  ;;  %v2769_v37 = vunpack.c.l.b16 %v990_v43  ;;  %v885_v30 = vmul.f32 0.015625, %v5972_v8  ;;  %v2997_v42 = vrot.slane %v2760_v29, %v4574_v54  ;;  %v5976_v35 = vld [vmem:[#allocation13_spill] sm:$0xff] }
 0x120   : > { %v4810_v17 = vpop.xlane.xlu1 %638  ;;  %v4812_v5 = vpop.xlane.xlu0 %635  ;;  %v873_v4 = vmul.f32 0.015625, %v5962_v56  ;;  %v2992_v56 = vrot.slane %v2759_v21, %v4571_v59  ;;  %v991_v21 = vpack.c.bf16 %v883_v58, %v882_v23  ;;  %v874_v16 = vmul.f32 0.015625, %v5976_v35 }
 0x121   : > { %v4845_v26 = vsel %vm459_vm0, %v433_v15, 0.0  ;;  %v3027_v58 = vsel %vm1912_vm1, %v3026_v60, %v3022_v13  ;;  %v3036_v23 = vrot.slane %v2768_v34, %v4381_v50  ;;  %v887_v60 = vmul.f32 0.015625, %v4615_v48  ;;  %v5977_v34 = vld [vmem:[#allocation27_spill] sm:$0xff] }
 0x122   : > { %5971 = vst [vmem:[#allocation11_spill] sm:$0xff] %v4845_v26  ;;  %v986_v53 = vpack.c.bf16 %v873_v4, %v872_v36  ;;  %v2993_v15 = vsel %vm5901_vm10, %v2992_v56, %v2988_v25  ;;  %v5975_v4 = vld [vmem:[#allocation12_spill] sm:$0xff]  ;;  %v2771_v29 = vunpack.c.l.b16 %v991_v21  ;;  %v893_v25 = vmul.f32 0.015625, %v4692_v32 }
 0x123   : > { %1375 = vmax.xlane.bf16.xlu1 %v4672_v14  ;;  %v4840_v14 = vsel %vm459_vm0, %v5969_v45, 4286644096  ;;  %v875_v36 = vmul.f32 0.015625, %v5975_v4  ;;  %v892_v4 = vmul.f32 0.015625, %v4694_v11  ;;  %v4889_v35 = vsel %vm459_vm0, %v4012_v1, 4286644096 }
 0x124   : > { %v4829_v28 = vpop.xlane.xlu1 %644  ;;  %v4831_v24 = vpop.xlane.xlu0 %641  ;;  %5970 = vst [vmem:[#allocation10_spill] sm:$0xff] %v4840_v14  ;;  %v2761_v8 = vunpack.c.l.b16 %v986_v53  ;;  %v2762_v26 = vunpack.c.h.b16 %v986_v53  ;;  %v3032_v14 = vsel %vm1919_vm2, %v3031_v52, %v3027_v58  ;;  %v886_v53 = vmul.f32 0.015625, %v5977_v34  ;;  %v5979_v34 = vld [vmem:[#allocation29_spill] sm:$0xff] }
 0x125   : > { %5966 = vst [vmem:[#allocation18_spill] sm:$0xff] %v4831_v24  ;;  %v5973_v24 = vld [vmem:[#allocation26_spill] sm:$0xff]  ;;  %v895_v52 = vmul.f32 0.015625, %v4716_v31  ;;  %v3037_v32 = vsel %vm1926_vm3, %v3036_v23, %v3032_v14  ;;  %v3051_v31 = vrot.slane %v2771_v29, %v4544_v18  ;;  %v897_v1 = vmul.f32 0.015625, %v4733_v33 }
 0x126   : > { %v884_v45 = vmul.f32 0.015625, %v5973_v24  ;;  %v2770_v24 = vunpack.c.h.b16 %v990_v43  ;;  %v3007_v23 = vrot.slane %v2762_v26, %v4580_v44 }
 0x127   : > { %806 = vadd.xlane.f32.xlu0 %v4675_v41  ;;  %v434_v41 = vunpack.c.h.bf16 %v4799_v57  ;;  %v5984_v57 = vld [vmem:[#allocation35_spill] sm:$0xff] }
 0x128   : > { %v4852_v63 = vpop.xlane.xlu1 %650  ;;  %v4854_v46 = vpop.xlane.xlu0 %647  ;;  %v992_v56 = vpack.c.bf16 %v885_v30, %v884_v45  ;;  %v3046_v11 = vrot.slane %v2770_v24, %v4541_v20  ;;  %v2998_v30 = vsel %vm5903_vm11, %v2997_v42, %v2993_v15  ;;  %v2772_v45 = vunpack.c.h.b16 %v991_v21 }
 0x129   : > { %5974 = vst [vmem:[#allocation20_spill] sm:$0xff] %v4854_v46  ;;  %v3041_v46 = vrot.slane %v2769_v37, %v4525_v38  ;;  %v4878_v37 = vpack.c.bf16 %v875_v36, %v874_v16  ;;  %v996_v36 = vpack.c.bf16 %v893_v25, %v892_v4  ;;  %v4893_v58 = vsel %vm459_vm0, %v434_v41, 0.0  ;;  %v5978_v4 = vld [vmem:[#allocation28_spill] sm:$0xff] }
 0x12a   : > { %v993_v15 = vpack.c.bf16 %v887_v60, %v886_v53  ;;  %v896_v24 = vmul.f32 0.015625, %v4735_v3  ;;  %v3056_v29 = vrot.slane %v2772_v45, %v4550_v47  ;;  %v2774_v25 = vunpack.c.h.b16 %v992_v56 }
 0x12b   : > { %1415 = vmax.xlane.bf16.xlu1 %v4679_v9  ;;  %1490 = vmax.xlane.bf16.xlu0 %v4689_v27  ;;  %v894_v9 = vmul.f32 0.015625, %v4718_v7  ;;  %v4884_v27 = vsel %vm459_vm0, %v4600_v6, 4286644096  ;;  %v3042_v48 = vsel %vm1933_vm4, %v3041_v46, %v3037_v32  ;;  %v2773_v7 = vunpack.c.l.b16 %v992_v56 }
 0x12c   : > { %v4870_v13 = vpop.xlane.xlu1 %656  ;;  %v4872_v43 = vpop.xlane.xlu0 %653  ;;  %v3002_v6 = vrot.slane %v2761_v8, %v4577_v19  ;;  %v2763_v21 = vunpack.c.l.b16 %v4878_v37  ;;  %v3047_v46 = vsel %vm1940_vm5, %v3046_v11, %v3042_v48  ;;  %v889_v41 = vmul.f32 0.015625, %v5978_v4 }
 0x12d   : > { %v997_v42 = vpack.c.bf16 %v895_v52, %v894_v9  ;;  %v888_v32 = vmul.f32 0.015625, %v5979_v34  ;;  %v3052_v26 = vsel %vm5899_vm6, %v3051_v31, %v3047_v46  ;;  %v3061_v8 = vrot.slane %v2773_v7, %v4554_v61  ;;  %v4013_v31 = vld [vmem:[%s4180_s5 + $0x118] sm:$0xff]  }
 0x12e   : > { %v2781_v60 = vunpack.c.l.b16 %v996_v36  ;;  %v2782_v53 = vunpack.c.h.b16 %v996_v36  ;;  %v3003_v52 = vsel %vm5902_vm12, %v3002_v6, %v2998_v30  ;;  %v2775_v9 = vunpack.c.l.b16 %v993_v15 }
 0x12f   : > { %v2783_v11 = vunpack.c.l.b16 %v997_v42  ;;  %v998_v48 = vpack.c.bf16 %v897_v1, %v896_v24  ;;  %v899_v45 = vmul.f32 0.015625, %v4764_v12  ;;  %v3057_v7 = vsel %vm5900_vm7, %v3056_v29, %v3052_v26 }
 0x130   : > { %v663_v16 = vpop.xlane.xlu1 %662  ;;  %v660_v14 = vpop.xlane.xlu0 %659  ;;  %v3066_v36 = vrot.slane %v2774_v25, %v4557_v22  ;;  %v2776_v46 = vunpack.c.h.b16 %v993_v15  ;;  %v3062_v4 = vsel %vm1961_vm8, %v3061_v8, %v3057_v7  ;;  %v3101_v30 = vrot.slane %v2781_v60, %v4385_v51 }
 0x131   : > { %v3105_v6 = vrot.slane %v2782_v53, %v4388_v55  ;;  %v2784_v34 = vunpack.c.h.b16 %v997_v42  ;;  %v4923_v12 = vsel %vm1996_vm13, %v3007_v23, %v3003_v52  ;;  %v3110_v24 = vrot.slane %v2783_v11, %v4378_v49  ;;  %v5980_v23 = vld [vmem:[#allocation33_spill] sm:$0xff] }
 0x132   : > { %v2785_v15 = vunpack.c.l.b16 %v998_v48  ;;  %v901_v25 = vmul.f32 0.015625, %v4784_v40  ;;  %v3067_v42 = vsel %vm1968_vm9, %v3066_v36, %v3062_v4  ;;  %v3076_v26 = vrot.slane %v2776_v46, %v4574_v54 }
 0x133   : > { %1600 = vmax.xlane.bf16.xlu1 %v4698_v39  ;;  %1565 = vmax.xlane.bf16.xlu0 %v4702_v62  ;;  %v898_v39 = vmul.f32 0.015625, %v4766_v2  ;;  %v994_v62 = vpack.c.bf16 %v889_v41, %v888_v32  ;;  %v3071_v2 = vrot.slane %v2775_v9, %v4571_v59  ;;  %v900_v41 = vmul.f32 0.015625, %v4786_v10  ;;  %v5981_v9 = vld [vmem:[#allocation34_spill] sm:$0xff] }
 0x134   : > { %v669_v33 = vpop.xlane.xlu1 %668  ;;  %v666_v3 = vpop.xlane.xlu0 %665  ;;  %v4930_v32 = vrot.slane %v2763_v21, %v5951_v0  ;;  %v3106_v60 = vsel %vm1912_vm1, %v3105_v6, %v3101_v30  ;;  %v3115_v53 = vrot.slane %v2784_v34, %v4381_v50  ;;  %v909_v52 = vmul.f32 0.015625, %v4870_v13  ;;  %v5982_v6 = vld [vmem:[#allocation31_spill] sm:$0xff] }
 0x135   : > { %v999_v29 = vpack.c.bf16 %v899_v45, %v898_v39  ;;  %v2777_v8 = vunpack.c.l.b16 %v994_v62  ;;  %v908_v40 = vmul.f32 0.015625, %v4872_v43  ;;  %v3111_v11 = vsel %vm1919_vm2, %v3110_v24, %v3106_v60 }
 0x136   : > { %v2786_v45 = vunpack.c.h.b16 %v998_v48  ;;  %v911_v39 = vmul.f32 0.015625, %v663_v16  ;;  %v910_v7 = vmul.f32 0.015625, %v660_v14  ;;  %v3072_v36 = vsel %vm5901_vm10, %v3071_v2, %v3067_v42  ;;  %v5985_v2 = vld [vmem:[#allocation5_spill] sm:$0xff] }
 0x137   : > { %v3120_v46 = vrot.slane %v2785_v15, %v4525_v38  ;;  %v2787_v4 = vunpack.c.l.b16 %v999_v29  ;;  %v1000_v30 = vpack.c.bf16 %v901_v25, %v900_v41  ;;  %v2778_v13 = vunpack.c.h.b16 %v994_v62 }
 0x138   : > { %v4918_v56 = vpop.xlane.xlu1 %674  ;;  %v4920_v1 = vpop.xlane.xlu0 %671  ;;  %v3081_v43 = vrot.slane %v2777_v8, %v4577_v19  ;;  %v891_v34 = vmul.f32 0.015625, %v5982_v6  ;;  %v3116_v24 = vsel %vm1926_vm3, %v3115_v53, %v3111_v11  ;;  %v903_v16 = vmul.f32 0.015625, %v4810_v17  ;;  %v5986_v11 = vld [vmem:[#allocation24_spill] sm:$0xff] }
 0x139   : > { %v902_v14 = vmul.f32 0.015625, %v4812_v5  ;;  %v1004_v48 = vpack.c.bf16 %v909_v52, %v908_v40  ;;  %v3125_v25 = vrot.slane %v2786_v45, %v4541_v20  ;;  %v1005_v41 = vpack.c.bf16 %v911_v39, %v910_v7 }
 0x13a   : > { %v913_v42 = vmul.f32 0.015625, %v669_v33  ;;  %v912_v8 = vmul.f32 0.015625, %v666_v3  ;;  %v2788_v60 = vunpack.c.h.b16 %v999_v29  ;;  %v3130_v53 = vrot.slane %v2787_v4, %v4544_v18 }
 0x13b   : > { %764 = vadd.xlane.f32.xlu1 %v5980_v23  ;;  %761 = vadd.xlane.f32.xlu0 %v5981_v9  ;;  %v5983_v23 = vld [vmem:[#allocation32_spill] sm:$0xff]  ;;  %v2789_v17 = vunpack.c.l.b16 %v1000_v30  ;;  %v5987_v5 = vunpack.c.h.b16 %v4878_v37  ;;  %v3077_v40 = vsel %vm5903_vm11, %v3076_v26, %v3072_v36  ;;  %v3086_v6 = vrot.slane %v2778_v13, %v4580_v44 }
 0x13c   : > { %v4940_v10 = vpop.xlane.xlu1 %680  ;;  %v4942_v21 = vpop.xlane.xlu0 %677  ;;  %v890_v9 = vmul.f32 0.015625, %v5983_v23  ;;  %v4970_v45 = vsel %vm459_vm0, %v4013_v31, 4286644096  ;;  %v1001_v3 = vpack.c.bf16 %v903_v16, %v902_v14  ;;  %v2797_v39 = vunpack.c.l.b16 %v1004_v48 }
 0x13d   : > { %v4965_v52 = vrot.slane %v5987_v5, %v5986_v11  ;;  %v2798_v29 = vunpack.c.h.b16 %v1004_v48  ;;  %v2799_v4 = vunpack.c.l.b16 %v1005_v41  ;;  %v1006_v23 = vpack.c.bf16 %v913_v42, %v912_v8  ;;  %v5989_v48 = vld [vmem:[#allocation37_spill] sm:$0xff] }
 0x13e   : > { %v4972_v33 = vpack.c.bf16 %v891_v34, %v890_v9  ;;  %v3135_v31 = vrot.slane %v2788_v60, %v4550_v47  ;;  %v2790_v36 = vunpack.c.h.b16 %v1000_v30  ;;  %v3140_v13 = vrot.slane %v2789_v17, %v4554_v61  ;;  %v5988_v9 = vld [vmem:[#allocation18_spill] sm:$0xff] }
 0x13f   : > { %1530 = vmax.xlane.bf16.xlu1 %v5984_v57  ;;  %1455 = vmax.xlane.bf16.xlu0 %v5985_v2  ;;  %v3121_v57 = vsel %vm1933_vm4, %v3120_v46, %v3116_v24  ;;  %v3082_v46 = vsel %vm5902_vm12, %v3081_v43, %v3077_v40  ;;  %v905_v34 = vmul.f32 0.015625, %v4829_v28  ;;  %v904_v16 = vmul.f32 0.015625, %v5988_v9 }
 0x140   : > { %v4955_v15 = vpop.xlane.xlu1 %686  ;;  %v4957_v62 = vpop.xlane.xlu0 %683  ;;  %v3126_v37 = vsel %vm1940_vm5, %v3125_v25, %v3121_v57  ;;  %v915_v14 = vmul.f32 0.015625, %v4918_v56  ;;  %v914_v43 = vmul.f32 0.015625, %v4920_v1  ;;  %v2791_v2 = vunpack.c.l.b16 %v1001_v3  ;;  %v5990_v57 = vld [vmem:[#allocation22_spill] sm:$0xff] }
 0x141   : > { %v3131_v26 = vsel %vm5899_vm6, %v3130_v53, %v3126_v37  ;;  %v3180_v25 = vrot.slane %v2797_v39, %v4385_v51  ;;  %v3184_v42 = vrot.slane %v2798_v29, %v4388_v55  ;;  %v2800_v8 = vunpack.c.h.b16 %v1005_v41  ;;  %v5991_v53 = vld [vmem:[#allocation30_spill] sm:$0xff] }
 0x142   : > { %v4996_v28 = vsel %vm2003_vm14, %v4930_v32, %v4923_v12  ;;  %v3189_v56 = vrot.slane %v2799_v4, %v4378_v49  ;;  %v2801_v1 = vunpack.c.l.b16 %v1006_v23  ;;  %v5003_v17 = vsel %vm459_vm0, %v5991_v53, 4286644096 }
 0x143   : > { %v2779_v41 = vunpack.c.l.b16 %v4972_v33  ;;  %v3136_v5 = vsel %vm5900_vm7, %v3135_v31, %v3131_v26  ;;  %v3145_v40 = vrot.slane %v2790_v36, %v4557_v22  ;;  %v2792_v39 = vunpack.c.h.b16 %v1001_v3 }
 0x144   : > { %v4974_v7 = vpop.xlane.xlu1 %692  ;;  %v4978_v24 = vpop.xlane.xlu0 %689  ;;  %v5009_v29 = vsel %vm1996_vm13, %v3086_v6, %v3082_v46  ;;  %v3141_v12 = vsel %vm1961_vm8, %v3140_v13, %v3136_v5  ;;  %v1002_v32 = vpack.c.bf16 %v905_v34, %v904_v16  ;;  %v1007_v37 = vpack.c.bf16 %v915_v14, %v914_v43 }
 0x145   : > { %v2780_v4 = vunpack.c.h.b16 %v4972_v33  ;;  %v3150_v9 = vrot.slane %v2791_v2, %v4571_v59  ;;  %v2802_v31 = vunpack.c.h.b16 %v1006_v23  ;;  %v3199_v3 = vrot.slane %v2801_v1, %v4525_v38 }
 0x146   : > { %v5019_v36 = vrot.slane %v2779_v41, %v5951_v0  ;;  %v3146_v13 = vsel %vm1968_vm9, %v3145_v40, %v3141_v12  ;;  %v3155_v34 = vrot.slane %v2792_v39, %v4574_v54  ;;  %v2793_v14 = vunpack.c.l.b16 %v1002_v32  ;;  %v5993_v41 = vld [vmem:[#allocation14_spill] sm:$0xff] }
 0x147   : > { %1640 = vmax.xlane.bf16.xlu1 %v5989_v48  ;;  %1605 = vmax.xlane.bf16.xlu0 %v5990_v57  ;;  %v3185_v48 = vsel %vm1912_vm1, %v3184_v42, %v3180_v25  ;;  %v3194_v57 = vrot.slane %v2800_v8, %v4381_v50  ;;  %v2803_v43 = vunpack.c.l.b16 %v1007_v37  ;;  %v917_v2 = vmul.f32 0.015625, %v4940_v10  ;;  %v5992_v42 = vld [vmem:[#allocation9_spill] sm:$0xff] }
 0x148   : > { %v4991_v30 = vpop.xlane.xlu1 %698  ;;  %v4999_v60 = vpop.xlane.xlu0 %695  ;;  %v3190_v26 = vsel %vm1919_vm2, %v3189_v56, %v3185_v48  ;;  %v916_v25 = vmul.f32 0.015625, %v4942_v21  ;;  %v2794_v23 = vunpack.c.h.b16 %v1002_v32  ;;  %v907_v8 = vmul.f32 0.015625, %v4852_v63 }
 0x149   : > { %v3195_v56 = vsel %vm1926_vm3, %v3194_v57, %v3190_v26  ;;  %v3151_v40 = vsel %vm5901_vm10, %v3150_v9, %v3146_v13  ;;  %v3204_v12 = vrot.slane %v2802_v31, %v4541_v20  ;;  %v2804_v21 = vunpack.c.h.b16 %v1007_v37  ;;  %v5995_v31 = vld [vmem:[#allocation20_spill] sm:$0xff]  ;;  %v5996_v37 = vld [vmem:[#allocation23_spill] sm:$0xff] }
 0x14a   : > { %v3200_v39 = vsel %vm1933_vm4, %v3199_v3, %v3195_v56  ;;  %v3209_v63 = vrot.slane %v2803_v43, %v4544_v18  ;;  %v919_v57 = vmul.f32 0.015625, %v4955_v15  ;;  %v918_v26 = vmul.f32 0.015625, %v4957_v62 }
 0x14b   : > { %v3156_v9 = vsel %vm5903_vm11, %v3155_v34, %v3151_v40  ;;  %v3160_v3 = vrot.slane %v2793_v14, %v4577_v19  ;;  %v906_v13 = vmul.f32 0.015625, %v5995_v31  ;;  %v3214_v40 = vrot.slane %v2804_v21, %v4550_v47 }
 0x14c   : > { %v705_v53 = vpop.xlane.xlu1 %704  ;;  %v702_v46 = vpop.xlane.xlu0 %701 }
 0x14d   : > { %v925_v6 = vmul.f32 0.015625, %v705_v53  ;;  %v924_v16 = vmul.f32 0.015625, %v702_v46  ;;  %v5051_v31 = vpack.c.bf16 %v907_v8, %v906_v13  ;;  %v923_v13 = vmul.f32 0.015625, %v4991_v30 }
 0x14e   : > { %v5067_v30 = vsel %vm5902_vm12, %v3160_v3, %v3156_v9 }
 0x14f   : > { %812 = vadd.xlane.f32.xlu1 %v5992_v42  ;;  %v1012_v1 = vpack.c.bf16 %v925_v6, %v924_v16  ;;  %809 = vadd.xlane.f32.xlu0 %v5993_v41  ;;  %v1008_v42 = vpack.c.bf16 %v917_v2, %v916_v25  ;;  %v5994_v6 = vld [vmem:[#allocation17_spill] sm:$0xff]  ;;  %v3205_v25 = vsel %vm1940_vm5, %v3204_v12, %v3200_v39 }
 0x150   : > { %v711_v5 = vpop.xlane.xlu1 %710  ;;  %v708_v48 = vpop.xlane.xlu0 %707 }
 0x151   : > { %v927_v10 = vmul.f32 0.015625, %v711_v5  ;;  %v2813_v53 = vunpack.c.l.b16 %v1012_v1  ;;  %v2814_v46 = vunpack.c.h.b16 %v1012_v1  ;;  %v926_v32 = vmul.f32 0.015625, %v708_v48 }
 0x152   : > { %v5041_v1 = vrot.slane %v2794_v23, %v4580_v44  ;;  %v3210_v5 = vsel %vm5899_vm6, %v3209_v63, %v3205_v25  ;;  %v1009_v48 = vpack.c.bf16 %v919_v57, %v918_v26  ;;  %v921_v23 = vmul.f32 0.015625, %v4974_v7  ;;  %v5998_v25 = vld [vmem:[#allocation10_spill] sm:$0xff] }
 0x153   : > { %1420 = vmax.xlane.bf16.xlu1 %v5994_v6  ;;  %v1013_v16 = vpack.c.bf16 %v927_v10, %v926_v32  ;;  %1380 = vmax.xlane.bf16.xlu0 %v5996_v37  ;;  %v3259_v43 = vrot.slane %v2813_v53, %v4385_v51  ;;  %v3263_v15 = vrot.slane %v2814_v46, %v4388_v55  ;;  %v2805_v10 = vunpack.c.l.b16 %v1008_v42 }
 0x154   : > { %v717_v56 = vpop.xlane.xlu1 %716  ;;  %v714_v2 = vpop.xlane.xlu0 %713  ;;  %v920_v32 = vmul.f32 0.015625, %v4978_v24  ;;  %v3215_v7 = vsel %vm5900_vm7, %v3214_v40, %v3210_v5  ;;  %v2806_v24 = vunpack.c.h.b16 %v1008_v42 }
 0x155   : > { %v929_v62 = vmul.f32 0.015625, %v717_v56  ;;  %v2815_v34 = vunpack.c.l.b16 %v1013_v16  ;;  %v2816_v41 = vunpack.c.h.b16 %v1013_v16  ;;  %v928_v14 = vmul.f32 0.015625, %v714_v2  ;;  %v5997_v2 = vld [vmem:[#allocation19_spill] sm:$0xff] }
 0x156   : > { %v3264_v39 = vsel %vm1912_vm1, %v3263_v15, %v3259_v43  ;;  %v3219_v56 = vrot.slane %v2805_v10, %v4554_v61  ;;  %v1010_v8 = vpack.c.bf16 %v921_v23, %v920_v32 }
 0x157   : > { %v3268_v53 = vrot.slane %v2815_v34, %v4378_v49  ;;  %v1014_v46 = vpack.c.bf16 %v929_v62, %v928_v14  ;;  %v3273_v12 = vrot.slane %v2816_v41, %v4381_v50  ;;  %v2807_v62 = vunpack.c.l.b16 %v1009_v48 }
 0x158   : > { %v723_v6 = vpop.xlane.xlu1 %722  ;;  %v720_v63 = vpop.xlane.xlu0 %719  ;;  %v922_v41 = vmul.f32 0.015625, %v4999_v60 }
 0x159   : > { %v931_v16 = vmul.f32 0.015625, %v723_v6  ;;  %v3269_v21 = vsel %vm1919_vm2, %v3268_v53, %v3264_v39  ;;  %v2817_v37 = vunpack.c.l.b16 %v1014_v46  ;;  %v2818_v57 = vunpack.c.h.b16 %v1014_v46 }
 0x15a   : > { %v930_v26 = vmul.f32 0.015625, %v720_v63  ;;  %v3274_v14 = vsel %vm1926_vm3, %v3273_v12, %v3269_v21  ;;  %v3220_v46 = vsel %vm1961_vm8, %v3219_v56, %v3215_v7  ;;  %v3224_v6 = vrot.slane %v2806_v24, %v4557_v22 }
 0x15b   : > { %1570 = vmax.xlane.bf16.xlu1 %v5997_v2  ;;  %v3278_v43 = vrot.slane %v2817_v37, %v4525_v38  ;;  %1495 = vmax.xlane.bf16.xlu0 %v5998_v25  ;;  %v3283_v42 = vrot.slane %v2818_v57, %v4541_v20  ;;  %v2808_v39 = vunpack.c.h.b16 %v1009_v48  ;;  %v3229_v60 = vrot.slane %v2807_v62, %v4571_v59 }
 0x15c   : > { %v1015_v15 = vpack.c.bf16 %v931_v16, %v930_v26  ;;  %v729_v34 = vpop.xlane.xlu1 %728  ;;  %v726_v40 = vpop.xlane.xlu0 %725  ;;  %v2809_v12 = vunpack.c.l.b16 %v1010_v8  ;;  %v5073_v37 = vpack.c.bf16 %v923_v13, %v922_v41  ;;  %v2795_v62 = vunpack.c.l.b16 %v5051_v31 }
 0x15d   : > { %v933_v5 = vmul.f32 0.015625, %v729_v34  ;;  %v3279_v10 = vsel %vm1933_vm4, %v3278_v43, %v3274_v14  ;;  %v932_v32 = vmul.f32 0.015625, %v726_v40  ;;  %v3225_v2 = vsel %vm1968_vm9, %v3224_v6, %v3220_v46 }
 0x15e   : > { %v2819_v53 = vunpack.c.l.b16 %v1015_v15  ;;  %v2820_v23 = vunpack.c.h.b16 %v1015_v15  ;;  %v3284_v57 = vsel %vm1940_vm5, %v3283_v42, %v3279_v10  ;;  %v3234_v43 = vrot.slane %v2808_v39, %v4574_v54  ;;  %v5999_v15 = vld [vmem:[#allocation11_spill] sm:$0xff] }
 0x15f   : > { %v1016_v63 = vpack.c.bf16 %v933_v5, %v932_v32  ;;  %v2810_v13 = vunpack.c.h.b16 %v1010_v8  ;;  %v3230_v25 = vsel %vm5901_vm10, %v3229_v60, %v3225_v2  ;;  %v3239_v34 = vrot.slane %v2809_v12, %v4577_v19 }
 0x160   : > { %v3288_v16 = vrot.slane %v2819_v53, %v4544_v18  ;;  %v735_v21 = vpop.xlane.xlu1 %734  ;;  %v3293_v26 = vrot.slane %v2820_v23, %v4550_v47  ;;  %v732_v3 = vpop.xlane.xlu0 %731  ;;  %v2811_v5 = vunpack.c.l.b16 %v5073_v37  ;;  %v2796_v39 = vunpack.c.h.b16 %v5051_v31 }
 0x161   : > { %v935_v9 = vmul.f32 0.015625, %v735_v21  ;;  %v2821_v24 = vunpack.c.l.b16 %v1016_v63  ;;  %v2822_v48 = vunpack.c.h.b16 %v1016_v63  ;;  %v934_v56 = vmul.f32 0.015625, %v732_v3 }
 0x162   : > { %v3289_v7 = vsel %vm5899_vm6, %v3288_v16, %v3284_v57  ;;  %vm2565_vm6 = vcmask 1041409   ;;  %v3170_v60 = vrot.slane %v2795_v62, %v5951_v0  ;;  %v3244_v12 = vrot.slane %v2810_v13, %v4580_v44 }
 0x163   : > { %767 = vadd.xlane.f32.xlu1 %v5999_v15  ;;  %v3298_v41 = vrot.slane %v2821_v24, %v4554_v61  ;;  %v1017_v14 = vpack.c.bf16 %v935_v9, %v934_v56  ;;  %1645 = vmax.xlane.bf16.xlu0 %v4884_v27  ;;  %v3294_v40 = vsel %vm5900_vm7, %v3293_v26, %v3289_v7  ;;  %vm2567_vm7 = vcmask 1042434  }
 0x164   : > { %v741_v42 = vpop.xlane.xlu1 %740  ;;  %v3303_v10 = vrot.slane %v2822_v48, %v4557_v22  ;;  %v738_v8 = vpop.xlane.xlu0 %737  ;;  %v3235_v27 = vsel %vm5903_vm11, %v3234_v43, %v3230_v25  ;;  %v2812_v63 = vunpack.c.h.b16 %v5073_v37  ;;  %v3249_v9 = vrot.slane %v2811_v5, %v5951_v0  ;;  %v6001_v5 = vld [vmem:[#allocation8_spill] sm:$0xff] }
 0x165   : > { %v937_v53 = vmul.f32 0.015625, %v741_v42  ;;  %v3299_v23 = vsel %vm1961_vm8, %v3298_v41, %v3294_v40  ;;  %v2823_v32 = vunpack.c.l.b16 %v1017_v14  ;;  %v2824_v46 = vunpack.c.h.b16 %v1017_v14  ;;  %v6000_v42 = vld [vmem:[#allocation16_spill] sm:$0xff] }
 0x166   : > { %v936_v6 = vmul.f32 0.015625, %v738_v8  ;;  %v3240_v16 = vsel %vm5902_vm12, %v3239_v34, %v3235_v27  ;;  %v3304_v31 = vsel %vm1968_vm9, %v3303_v10, %v3299_v23  ;;  %v3018_v37 = vsel %vm2010_vm15, %v4965_v52, %v4996_v28  ;;  %v5119_v52 = vld [vmem:[%s4180_s5 + $0x1d8] sm:$0xff]  }
 0x167   : > { %1460 = vmax.xlane.bf16.xlu1 %v4889_v35  ;;  %v3308_v21 = vrot.slane %v2823_v32, %v4571_v59  ;;  %v3313_v3 = vrot.slane %v2824_v46, %v4574_v54  ;;  %v3092_v2 = vsel %vm2003_vm14, %v5019_v36, %v5009_v29  ;;  %v3096_v43 = vrot.slane %v2780_v4, %v5986_v11 }
 0x168   : > { %v1018_v57 = vpack.c.bf16 %v937_v53, %v936_v6  ;;  %v747_v26 = vpop.xlane.xlu1 %746  ;;  %v744_v24 = vpop.xlane.xlu0 %743  ;;  %v3166_v13 = vsel %vm1996_vm13, %v5041_v1, %v5067_v30  ;;  %v3175_v25 = vrot.slane %v2796_v39, %v5986_v11  ;;  %v3245_v28 = vsel %vm1996_vm13, %v3244_v12, %v3240_v16 }
 0x169   : > { %v939_v7 = vmul.f32 0.015625, %v747_v26  ;;  %v3309_v35 = vsel %vm5901_vm10, %v3308_v21, %v3304_v31  ;;  %v938_v62 = vmul.f32 0.015625, %v744_v24  ;;  %v3171_v15 = vsel %vm2003_vm14, %v3170_v60, %v3166_v13 }
 0x16a   : > { %v2825_v48 = vunpack.c.l.b16 %v1018_v57  ;;  %v2826_v56 = vunpack.c.h.b16 %v1018_v57  ;;  %v3254_v33 = vrot.slane %v2812_v63, %v5986_v11  ;;  %v3314_v29 = vsel %vm5903_vm11, %v3313_v3, %v3309_v35  ;;  %v4014_v63 = vld [vmem:[%s4180_s5 + $0x68] sm:$0xff]  }
 0x16b   : > { %v1019_v41 = vpack.c.bf16 %v939_v7, %v938_v62  ;;  %770 = vadd.xlane.f32.xlu0 %v4893_v58  ;;  %v3250_v36 = vsel %vm2003_vm14, %v3249_v9, %v3245_v28  ;;  %v2939_v58 = vsel %vm2010_vm15, %v6001_v5, %v6000_v42  ;;  %v3097_v40 = vsel %vm2010_vm15, %v3096_v43, %v3092_v2  ;;  %v4017_v5 = vld [vmem:[%s4180_s5 + $0xe0] sm:$0xff]  }
 0x16c   : > { %v3318_v34 = vrot.slane %v2825_v48, %v4577_v19  ;;  %v3323_v4 = vrot.slane %v2826_v56, %v4580_v44  ;;  %v450_v10 = vunpack.c.h.bf16 %v5119_v52  ;;  %vm2569_vm10 = vcmask 1043459  }
 0x16d   : > { %v2827_v30 = vunpack.c.l.b16 %v1019_v41  ;;  %v2828_v14 = vunpack.c.h.b16 %v1019_v41  ;;  %v3176_v53 = vsel %vm2010_vm15, %v3175_v25, %v3171_v15  ;;  %v3255_v32 = vsel %vm2010_vm15, %v3254_v33, %v3250_v36 }
 0x16e   : > { %v3319_v1 = vsel %vm5902_vm12, %v3318_v34, %v3314_v29  ;;  %vm5905_vm12 = vcmask 1044484   ;;  %v3493_v39 = vsel %vm2565_vm6, %v3018_v37, %v2939_v58  ;;  %vm5904_vm11 = vcmask 1045509  }
 0x16f   : > { %1535 = vmax.xlane.bf16.xlu1 %v4970_v45  ;;  %v3328_v8 = vrot.slane %v2827_v30, %v5951_v0  ;;  %v3333_v23 = vrot.slane %v2828_v14, %v5986_v11  ;;  %1610 = vmax.xlane.bf16.xlu0 %v5003_v17  ;;  %v3324_v46 = vsel %vm1996_vm13, %v3323_v4, %v3319_v1  ;;  %v449_v45 = vunpack.c.l.bf16 %v5119_v52  ;;  %v4015_v17 = vld [vmem:[%s4180_s5 + $0x28] sm:$0xff]   ;;  %v4016_v30 = vld [vmem:[%s4180_s5 + $0x158] sm:$0xff]  }
 0x170   : > { %v1401_v6 = vpop.xlane.xlu1 %1400  ;;  %v1361_v27 = vpop.xlane.xlu0 %1360  ;;  %v3494_v12 = vsel %vm2567_vm7, %v3097_v40, %v3493_v39  ;;  %v817_v16 = vsel %vm459_vm0, %v450_v10, 0.0  ;;  %v1423_v37 = vsel %vm459_vm0, %v4014_v63, 4286644096  ;;  %v1383_v2 = vsel %vm459_vm0, %v4015_v17, 4286644096 }
 0x171   : > { %v3329_v60 = vsel %vm2003_vm14, %v3328_v8, %v3324_v46  ;;  %v3495_v21 = vsel %vm2569_vm10, %v3176_v53, %v3494_v12  ;;  %v1789_v57 = vunpack.c.l.b16 %v1401_v6  ;;  %v1790_v26 = vunpack.c.h.b16 %v1401_v6 }
 0x172   : > { %v3334_v9 = vsel %vm2010_vm15, %v3333_v23, %v3329_v60  ;;  %v3496_v31 = vsel %vm5905_vm12, %v3255_v32, %v3495_v21  ;;  %v1773_v3 = vunpack.c.l.b16 %v1361_v27  ;;  %v1774_v7 = vunpack.c.h.b16 %v1361_v27 }
 0x173   : > { %v814_v24 = vsel %vm459_vm0, %v449_v45, 0.0  ;;  %v5151_v35 = vsel %vm5904_vm11, %v3334_v9, %v3496_v31  ;;  %v2015_v48 = vrot.slane %v1789_v57, %v4385_v51  ;;  %v2019_v56 = vrot.slane %v1790_v26, %v4388_v55  ;;  %v5176_v45 = vld [vmem:[%s4180_s5 + $0x1a0] sm:$0xff]  }
 0x174   : > { %v1906_v43 = vrot.slane %v1773_v3, %v4385_v51  ;;  %v1911_v13 = vrot.slane %v1774_v7, %v4388_v55  ;;  %v1573_v8 = vsel %vm459_vm0, %v4016_v30, 4286644096  ;;  %v1498_v6 = vsel %vm459_vm0, %v4017_v5, 4286644096  ;;  %v4018_v3 = vld [vmem:[%s4180_s5 + $0xa8] sm:$0xff]   ;;  %v6003_v5 = vld [vmem:[#allocation15_spill] sm:$0xff] }
 0x175   : > { %v2020_v4 = vsel %vm1912_vm1, %v2019_v56, %v2015_v48  ;;  %v435_v17 = vunpack.c.l.bf16 %v5176_v45  ;;  %vm6004_vm11 = vcmask 458112   ;;  %vm6005_vm12 = vcmask 523712  }
 0x176   : > { %v1913_v14 = vsel %vm1912_vm1, %v1911_v13, %v1906_v43  ;;  %v436_v13 = vunpack.c.h.bf16 %v5176_v45 }
 0x177   : > { %818 = vadd.xlane.f32.xlu1 %v817_v16  ;;  %815 = vadd.xlane.f32.xlu0 %v814_v24  ;;  %v772_v31 = vsel %vm459_vm0, %v435_v17, 0.0  ;;  %v6002_v24 = vld [vmem:[#allocation36_spill] sm:$0xff] }
 0x178   : > { %v1406_v62 = vpop.xlane.xlu1 %1405  ;;  %v1366_v34 = vpop.xlane.xlu0 %1365  ;;  %v1648_v48 = vsel %vm459_vm0, %v6002_v24, 4286644096 }
 0x179   : > { %v1791_v15 = vunpack.c.l.b16 %v1406_v62  ;;  %v1792_v25 = vunpack.c.h.b16 %v1406_v62  ;;  %v1775_v41 = vunpack.c.l.b16 %v1366_v34  ;;  %v1776_v28 = vunpack.c.h.b16 %v1366_v34 }
 0x17a   : > { %v1463_v62 = vsel %vm459_vm0, %v4018_v3, 4286644096 }
 0x17b   : > { %v2024_v33 = vrot.slane %v1791_v15, %v4378_v49  ;;  %v2029_v29 = vrot.slane %v1792_v25, %v4381_v50  ;;  %1425 = vmax.xlane.bf16.xlu1 %v1423_v37  ;;  %v1918_v36 = vrot.slane %v1775_v41, %v4378_v49  ;;  %v1925_v1 = vrot.slane %v1776_v28, %v4381_v50 }
 0x17c   : > { %1385 = vmax.xlane.bf16.xlu0 %v1383_v2 }
 0x17d   : > { %v2025_v42 = vsel %vm1919_vm2, %v2024_v33, %v2020_v4  ;;  %v1920_v40 = vsel %vm1919_vm2, %v1918_v36, %v1913_v14  ;;  %v4019_v33 = vld [vmem:[%s4180_s5 + $0x120] sm:$0xff]  }
 0x17e   : > { %v5169_v58 = vsel %vm1926_vm3, %v2029_v29, %v2025_v42  ;;  %v1927_v10 = vsel %vm1926_vm3, %v1925_v1, %v1920_v40  ;;  %v775_v1 = vsel %vm459_vm0, %v436_v13, 0.0  ;;  %v1538_v42 = vsel %vm459_vm0, %v4019_v33, 4286644096 }
 0x17f   : > { %v1613_v40 = vsel %vm459_vm0, %v6003_v5, 4286644096 }
 0x180   : > { %v1446_v53 = vpop.xlane.xlu1 %1445  ;;  %v1441_v23 = vpop.xlane.xlu0 %1440 }
 0x181   : > { %v1807_v32 = vunpack.c.l.b16 %v1446_v53  ;;  %v1808_v46 = vunpack.c.h.b16 %v1446_v53  ;;  %v1805_v39 = vunpack.c.l.b16 %v1441_v23  ;;  %v1806_v60 = vunpack.c.h.b16 %v1441_v23 }
 0x183   : > { %v2103_v27 = vrot.slane %v1807_v32, %v4378_v49  ;;  %1575 = vmax.xlane.bf16.xlu1 %v1573_v8  ;;  %v2094_v12 = vrot.slane %v1805_v39, %v4385_v51  ;;  %v2098_v16 = vrot.slane %v1806_v60, %v4388_v55  ;;  %v2108_v63 = vrot.slane %v1808_v46, %v4381_v50 }
 0x184   : > { %1500 = vmax.xlane.bf16.xlu0 %v1498_v6  ;;  %v750_v9 = vpop.xlane.xlu1 %749 }
 0x185   : > { %v2099_v21 = vsel %vm1912_vm1, %v2098_v16, %v2094_v12  ;;  %v940_v15 = vmul.f32 0.015625, %v750_v9 }
 0x186   : > { %v2104_v57 = vsel %vm1919_vm2, %v2103_v27, %v2099_v21 }
 0x187   : > { %v5186_v26 = vsel %vm1926_vm3, %v2108_v63, %v2104_v57 }
 0x188   : > { %v1481_v7 = vpop.xlane.xlu0 %1480 }
 0x189   : > { %v1821_v29 = vunpack.c.l.b16 %v1481_v7  ;;  %v1822_v4 = vunpack.c.h.b16 %v1481_v7 }
 0x18b   : > { %773 = vadd.xlane.f32.xlu1 %v772_v31  ;;  %v2173_v53 = vrot.slane %v1821_v29, %v4385_v51  ;;  %v2177_v8 = vrot.slane %v1822_v4, %v4388_v55 }
 0x18c   : > { %1650 = vmax.xlane.bf16.xlu0 %v1648_v48  ;;  %v1371_v56 = vpop.xlane.xlu1 %1370  ;;  %v753_v43 = vpop.xlane.xlu0 %752 }
 0x18d   : > { %v1777_v37 = vunpack.c.l.b16 %v1371_v56  ;;  %v1778_v2 = vunpack.c.h.b16 %v1371_v56  ;;  %v941_v25 = vmul.f32 0.015625, %v753_v43  ;;  %v2178_v21 = vsel %vm1912_vm1, %v2177_v8, %v2173_v53  ;;  %v4020_v56 = vld [vmem:[%s4180_s5 + $0x70] sm:$0xff]   ;;  %v4023_v8 = vld [vmem:[%s4180_s5 + $0xe8] sm:$0xff]  }
 0x18e   : > { %v1428_v43 = vsel %vm459_vm0, %v4020_v56, 4286644096 }
 0x18f   : > { %v1932_v34 = vrot.slane %v1777_v37, %v4525_v38  ;;  %v1939_v41 = vrot.slane %v1778_v2, %v4541_v20  ;;  %1465 = vmax.xlane.bf16.xlu1 %v1463_v62  ;;  %v1020_v28 = vpack.c.bf16 %v941_v25, %v940_v15  ;;  %v4021_v62 = vld [vmem:[%s4180_s5 + $0x30] sm:$0xff]  }
 0x190   : > { %v1388_v13 = vsel %vm459_vm0, %v4021_v62, 4286644096 }
 0x191   : > { %v1934_v36 = vsel %vm1933_vm4, %v1932_v34, %v1927_v10  ;;  %v5208_v10 = vld [vmem:[%s4180_s5 + $0x1e0] sm:$0xff]   ;;  %v2829_v15 = vunpack.c.l.b16 %v1020_v28  ;;  %v2830_v25 = vunpack.c.h.b16 %v1020_v28 }
 0x192   : > { %v5200_v30 = vsel %vm1940_vm5, %v1939_v41, %v1934_v36  ;;  %v452_v17 = vunpack.c.h.bf16 %v5208_v10  ;;  %v451_v9 = vunpack.c.l.bf16 %v5208_v10 }
 0x193   : > { %v3342_v53 = vrot.slane %v2830_v25, %v4388_v55 }
 0x194   : > { %776 = vadd.xlane.f32.xlu0 %v775_v1  ;;  %v1411_v14 = vpop.xlane.xlu1 %1410  ;;  %v1486_v46 = vpop.xlane.xlu0 %1485  ;;  %v823_v48 = vsel %vm459_vm0, %v452_v17, 0.0  ;;  %v820_v2 = vsel %vm459_vm0, %v451_v9, 0.0  ;;  %v4022_v1 = vld [vmem:[%s4180_s5 + $0x160] sm:$0xff]  }
 0x195   : > { %v1793_v23 = vunpack.c.l.b16 %v1411_v14  ;;  %v1794_v32 = vunpack.c.h.b16 %v1411_v14  ;;  %v1823_v6 = vunpack.c.l.b16 %v1486_v46  ;;  %v1824_v39 = vunpack.c.h.b16 %v1486_v46 }
 0x197   : > { %v2034_v60 = vrot.slane %v1793_v23, %v4525_v38  ;;  %v2039_v27 = vrot.slane %v1794_v32, %v4541_v20  ;;  %1540 = vmax.xlane.bf16.xlu1 %v1538_v42  ;;  %v2182_v12 = vrot.slane %v1823_v6, %v4378_v49  ;;  %v2187_v16 = vrot.slane %v1824_v39, %v4381_v50 }
 0x198   : > { %1615 = vmax.xlane.bf16.xlu0 %v1613_v40  ;;  %v756_v63 = vpop.xlane.xlu1 %755  ;;  %v3338_v40 = vrot.slane %v2829_v15, %v4385_v51  ;;  %v1578_v32 = vsel %vm459_vm0, %v4022_v1, 4286644096  ;;  %v1653_v1 = vsel %vm459_vm0, %v5119_v52, 4286644096 }
 0x199   : > { %v2035_v57 = vsel %vm1933_vm4, %v2034_v60, %v5169_v58  ;;  %v2183_v3 = vsel %vm1919_vm2, %v2182_v12, %v2178_v21  ;;  %v942_v29 = vmul.f32 0.015625, %v756_v63  ;;  %v1503_v21 = vsel %vm459_vm0, %v4023_v8, 4286644096 }
 0x19a   : > { %v5220_v31 = vsel %vm1940_vm5, %v2039_v27, %v2035_v57  ;;  %v5224_v7 = vsel %vm1926_vm3, %v2187_v16, %v2183_v3  ;;  %v3343_v12 = vsel %vm1912_vm1, %v3342_v53, %v3338_v40  ;;  %v5246_v57 = vld [vmem:[%s4180_s5 + $0x1a8] sm:$0xff]  }
 0x19c   : > { %v798_v24 = vpop.xlane.xlu1 %797  ;;  %v1521_v37 = vpop.xlane.xlu0 %1520 }
 0x19d   : > { %v956_v34 = vmul.f32 0.015625, %v798_v24  ;;  %v1837_v14 = vunpack.c.l.b16 %v1521_v37  ;;  %v1838_v42 = vunpack.c.h.b16 %v1521_v37 }
 0x19f   : > { %824 = vadd.xlane.f32.xlu1 %v823_v48  ;;  %v2252_v46 = vrot.slane %v1837_v14, %v4385_v51  ;;  %v2256_v6 = vrot.slane %v1838_v42, %v4388_v55 }
 0x1a0   : > { %821 = vadd.xlane.f32.xlu0 %v820_v2  ;;  %v801_v58 = vpop.xlane.xlu1 %800  ;;  %v759_v33 = vpop.xlane.xlu0 %758 }
 0x1a1   : > { %v957_v41 = vmul.f32 0.015625, %v801_v58  ;;  %v943_v4 = vmul.f32 0.015625, %v759_v33  ;;  %v2257_v37 = vsel %vm1912_vm1, %v2256_v6, %v2252_v46 }
 0x1a3   : > { %v5232_v36 = vpack.c.bf16 %v957_v41, %v956_v34  ;;  %1430 = vmax.xlane.bf16.xlu1 %v1428_v43  ;;  %v1021_v5 = vpack.c.bf16 %v943_v4, %v942_v29  ;;  %v437_v43 = vunpack.c.l.bf16 %v5246_v57  ;;  %v4024_v29 = vld [vmem:[%s4180_s5 + $0xb0] sm:$0xff]  }
 0x1a4   : > { %1390 = vmax.xlane.bf16.xlu0 %v1388_v13  ;;  %v1468_v42 = vsel %vm459_vm0, %v4024_v29, 4286644096 }
 0x1a5   : > { %v2831_v28 = vunpack.c.l.b16 %v1021_v5  ;;  %v2832_v23 = vunpack.c.h.b16 %v1021_v5  ;;  %v778_v33 = vsel %vm459_vm0, %v437_v43, 0.0  ;;  %v438_v5 = vunpack.c.h.bf16 %v5246_v57 }
 0x1a6   : > { %v2846_v40 = vunpack.c.h.b16 %v5232_v36 }
 0x1a7   : > { %v3347_v39 = vrot.slane %v2831_v28, %v4378_v49  ;;  %v3352_v60 = vrot.slane %v2832_v23, %v4381_v50 }
 0x1a8   : > { %v1526_v27 = vpop.xlane.xlu1 %1525  ;;  %v1451_v17 = vpop.xlane.xlu0 %1450 }
 0x1a9   : > { %v1839_v16 = vunpack.c.l.b16 %v1526_v27  ;;  %v1840_v63 = vunpack.c.h.b16 %v1526_v27  ;;  %v3348_v9 = vsel %vm1919_vm2, %v3347_v39, %v3343_v12  ;;  %v1809_v3 = vunpack.c.l.b16 %v1451_v17 }
 0x1aa   : > { %v1810_v24 = vunpack.c.h.b16 %v1451_v17  ;;  %v5250_v48 = vsel %vm1926_vm3, %v3352_v60, %v3348_v9  ;;  %v781_v39 = vsel %vm459_vm0, %v438_v5, 0.0  ;;  %v4025_v60 = vld [vmem:[%s4180_s5 + $0x128] sm:$0xff]   ;;  %v3421_v12 = vrot.slane %v2846_v40, %v4388_v55 }
 0x1ab   : > { %v2261_v56 = vrot.slane %v1839_v16, %v4378_v49  ;;  %v2266_v62 = vrot.slane %v1840_v63, %v4381_v50  ;;  %1580 = vmax.xlane.bf16.xlu1 %v1578_v32  ;;  %v2113_v2 = vrot.slane %v1809_v3, %v4525_v38 }
 0x1ac   : > { %v2118_v58 = vrot.slane %v1810_v24, %v4541_v20  ;;  %1505 = vmax.xlane.bf16.xlu0 %v1503_v21  ;;  %v804_v41 = vpop.xlane.xlu1 %803  ;;  %v1543_v24 = vsel %vm459_vm0, %v4025_v60, 4286644096 }
 0x1ad   : > { %v2262_v13 = vsel %vm1919_vm2, %v2261_v56, %v2257_v37  ;;  %v2114_v25 = vsel %vm1933_vm4, %v2113_v2, %v5186_v26  ;;  %v2845_v26 = vunpack.c.l.b16 %v5232_v36  ;;  %v958_v23 = vmul.f32 0.015625, %v804_v41 }
 0x1ae   : > { %v5260_v15 = vsel %vm1926_vm3, %v2266_v62, %v2262_v13  ;;  %v5265_v34 = vsel %vm1940_vm5, %v2118_v58, %v2114_v25  ;;  %v5293_v58 = vld [vmem:[%s4180_s5 + $0x1e8] sm:$0xff]  }
 0x1af   : > { %v3417_v27 = vrot.slane %v2845_v26, %v4385_v51  ;;  %v453_v40 = vunpack.c.l.bf16 %v5293_v58 }
 0x1b0   : > { %v1561_v4 = vpop.xlane.xlu0 %1560 }
 0x1b1   : > { %v3422_v56 = vsel %vm1912_vm1, %v3421_v12, %v3417_v27  ;;  %v1854_v5 = vunpack.c.h.b16 %v1561_v4 }
 0x1b3   : > { %779 = vadd.xlane.f32.xlu1 %v778_v33 }
 0x1b4   : > { %1655 = vmax.xlane.bf16.xlu0 %v1653_v1  ;;  %v1376_v14 = vpop.xlane.xlu1 %1375  ;;  %v807_v28 = vpop.xlane.xlu0 %806 }
 0x1b5   : > { %v1779_v53 = vunpack.c.l.b16 %v1376_v14  ;;  %v1780_v8 = vunpack.c.h.b16 %v1376_v14  ;;  %v959_v32 = vmul.f32 0.015625, %v807_v28 }
 0x1b7   : > { %v1946_v46 = vrot.slane %v1779_v53, %v4544_v18  ;;  %v1953_v52 = vrot.slane %v1780_v8, %v4550_v47  ;;  %1470 = vmax.xlane.bf16.xlu1 %v1468_v42  ;;  %v1029_v6 = vpack.c.bf16 %v959_v32, %v958_v23  ;;  %v1853_v42 = vunpack.c.l.b16 %v1561_v4 }
 0x1b9   : > { %v1948_v36 = vsel %vm6004_vm11, %v1946_v46, %v5200_v30  ;;  %v2847_v63 = vunpack.c.l.b16 %v1029_v6  ;;  %v2848_v17 = vunpack.c.h.b16 %v1029_v6  ;;  %v1618_v30 = vsel %vm459_vm0, %v5176_v45, 4286644096  ;;  %v4026_v46 = vld [vmem:[%s4180_s5 + $0x78] sm:$0xff]  }
 0x1ba   : > { %v5284_v16 = vsel %vm6005_vm12, %v1953_v52, %v1948_v36  ;;  %v454_v45 = vunpack.c.h.bf16 %v5293_v58  ;;  %v2331_v4 = vrot.slane %v1853_v42, %v4385_v51  ;;  %v2335_v52 = vrot.slane %v1854_v5, %v4388_v55 }
 0x1bb   : > { %v3426_v21 = vrot.slane %v2847_v63, %v4378_v49  ;;  %v3431_v9 = vrot.slane %v2848_v17, %v4381_v50  ;;  %v826_v6 = vsel %vm459_vm0, %v453_v40, 0.0  ;;  %v1433_v63 = vsel %vm459_vm0, %v4026_v46, 4286644096 }
 0x1bc   : > { %782 = vadd.xlane.f32.xlu0 %v781_v39  ;;  %v1416_v3 = vpop.xlane.xlu1 %1415  ;;  %v1491_v2 = vpop.xlane.xlu0 %1490  ;;  %v829_v32 = vsel %vm459_vm0, %v454_v45, 0.0  ;;  %v4027_v39 = vld [vmem:[%s4180_s5 + $0x38] sm:$0xff]   ;;  %v2336_v17 = vsel %vm1912_vm1, %v2335_v52, %v2331_v4 }
 0x1bd   : > { %v1795_v62 = vunpack.c.l.b16 %v1416_v3  ;;  %v1796_v37 = vunpack.c.h.b16 %v1416_v3  ;;  %v3427_v43 = vsel %vm1919_vm2, %v3426_v21, %v3422_v56  ;;  %v1825_v13 = vunpack.c.l.b16 %v1491_v2 }
 0x1be   : > { %v1826_v25 = vunpack.c.h.b16 %v1491_v2  ;;  %v5297_v41 = vsel %vm1926_vm3, %v3431_v9, %v3427_v43  ;;  %v1393_v3 = vsel %vm459_vm0, %v4027_v39, 4286644096  ;;  %v4028_v2 = vld [vmem:[%s4180_s5 + $0x168] sm:$0xff]  }
 0x1bf   : > { %v2044_v33 = vrot.slane %v1795_v62, %v4544_v18  ;;  %v2049_v29 = vrot.slane %v1796_v37, %v4550_v47  ;;  %1545 = vmax.xlane.bf16.xlu1 %v1543_v24  ;;  %v2192_v1 = vrot.slane %v1825_v13, %v4525_v38 }
 0x1c0   : > { %v2197_v14 = vrot.slane %v1826_v25, %v4541_v20  ;;  %1620 = vmax.xlane.bf16.xlu0 %v1618_v30  ;;  %v4029_v30 = vld [vmem:[%s4180_s5 + $0xf0] sm:$0xff]  }
 0x1c1   : > { %v2045_v26 = vsel %vm6004_vm11, %v2044_v33, %v5220_v31  ;;  %v2193_v8 = vsel %vm1933_vm4, %v2192_v1, %v5224_v7  ;;  %v1583_v1 = vsel %vm459_vm0, %v4028_v2, 4286644096  ;;  %v1508_v5 = vsel %vm459_vm0, %v4029_v30, 4286644096 }
 0x1c2   : > { %v5308_v53 = vsel %vm6005_vm12, %v2049_v29, %v2045_v26  ;;  %v5313_v28 = vsel %vm1940_vm5, %v2197_v14, %v2193_v8  ;;  %v5337_v26 = vld [vmem:[%s4180_s5 + $0x1b0] sm:$0xff]  }
 0x1c3   : > { %v439_v39 = vunpack.c.l.bf16 %v5337_v26 }
 0x1c4   : > { %v1601_v23 = vpop.xlane.xlu1 %1600  ;;  %v1566_v31 = vpop.xlane.xlu0 %1565 }
 0x1c5   : > { %v1855_v60 = vunpack.c.l.b16 %v1566_v31  ;;  %v1856_v27 = vunpack.c.h.b16 %v1566_v31 }
 0x1c7   : > { %830 = vadd.xlane.f32.xlu1 %v829_v32  ;;  %v2340_v7 = vrot.slane %v1855_v60, %v4378_v49  ;;  %v2345_v12 = vrot.slane %v1856_v27, %v4381_v50  ;;  %v1869_v60 = vunpack.c.l.b16 %v1601_v23 }
 0x1c8   : > { %827 = vadd.xlane.f32.xlu0 %v826_v6  ;;  %v765_v36 = vpop.xlane.xlu1 %764  ;;  %v762_v9 = vpop.xlane.xlu0 %761 }
 0x1c9   : > { %v945_v21 = vmul.f32 0.015625, %v765_v36  ;;  %v2341_v24 = vsel %vm1919_vm2, %v2340_v7, %v2336_v17  ;;  %v944_v56 = vmul.f32 0.015625, %v762_v9  ;;  %v784_v17 = vsel %vm459_vm0, %v439_v39, 0.0 }
 0x1ca   : > { %v5328_v62 = vsel %vm1926_vm3, %v2345_v12, %v2341_v24  ;;  %v2410_v9 = vrot.slane %v1869_v60, %v4385_v51  ;;  %v1623_v60 = vsel %vm459_vm0, %v5246_v57, 4286644096 }
 0x1cb   : > { %1435 = vmax.xlane.bf16.xlu1 %v1433_v63  ;;  %v1022_v37 = vpack.c.bf16 %v945_v21, %v944_v56  ;;  %v4030_v21 = vld [vmem:[%s4180_s5 + $0xb8] sm:$0xff]  }
 0x1cc   : > { %1395 = vmax.xlane.bf16.xlu0 %v1393_v3  ;;  %v1473_v30 = vsel %vm459_vm0, %v4030_v21, 4286644096 }
 0x1cd   : > { %v2833_v43 = vunpack.c.l.b16 %v1022_v37  ;;  %v2834_v13 = vunpack.c.h.b16 %v1022_v37 }
 0x1cf   : > { %v3357_v25 = vrot.slane %v2833_v43, %v4525_v38  ;;  %v3362_v33 = vrot.slane %v2834_v13, %v4541_v20 }
 0x1d0   : > { %v1531_v29 = vpop.xlane.xlu1 %1530  ;;  %v1456_v42 = vpop.xlane.xlu0 %1455 }
 0x1d1   : > { %v1841_v14 = vunpack.c.l.b16 %v1531_v29  ;;  %v1842_v45 = vunpack.c.h.b16 %v1531_v29  ;;  %v3358_v40 = vsel %vm1933_vm4, %v3357_v25, %v5250_v48  ;;  %v1811_v8 = vunpack.c.l.b16 %v1456_v42 }
 0x1d2   : > { %v1812_v32 = vunpack.c.h.b16 %v1456_v42  ;;  %v5342_v46 = vsel %vm1940_vm5, %v3362_v33, %v3358_v40  ;;  %v1870_v48 = vunpack.c.h.b16 %v1601_v23  ;;  %v440_v33 = vunpack.c.h.bf16 %v5337_v26 }
 0x1d3   : > { %v2271_v4 = vrot.slane %v1841_v14, %v4525_v38  ;;  %v2276_v52 = vrot.slane %v1842_v45, %v4541_v20  ;;  %1585 = vmax.xlane.bf16.xlu1 %v1583_v1  ;;  %v2123_v31 = vrot.slane %v1811_v8, %v4544_v18  ;;  %v4031_v45 = vld [vmem:[%s4180_s5 + $0x130] sm:$0xff]  }
 0x1d4   : > { %v2128_v6 = vrot.slane %v1812_v32, %v4550_v47  ;;  %1510 = vmax.xlane.bf16.xlu0 %v1508_v5  ;;  %v2414_v23 = vrot.slane %v1870_v48, %v4388_v55  ;;  %v787_v42 = vsel %vm459_vm0, %v440_v33, 0.0  ;;  %v5384_v48 = vld [vmem:[%s4180_s5 + $0x1f0] sm:$0xff]  }
 0x1d5   : > { %v2272_v27 = vsel %vm1933_vm4, %v2271_v4, %v5260_v15  ;;  %v2124_v12 = vsel %vm6004_vm11, %v2123_v31, %v5265_v34  ;;  %v1658_v15 = vsel %vm459_vm0, %v5208_v10, 4286644096 }
 0x1d6   : > { %v5352_v7 = vsel %vm1940_vm5, %v2276_v52, %v2272_v27  ;;  %v5357_v36 = vsel %vm6005_vm12, %v2128_v6, %v2124_v12  ;;  %v2415_v43 = vsel %vm1912_vm1, %v2414_v23, %v2410_v9  ;;  %v1548_v52 = vsel %vm459_vm0, %v4031_v45, 4286644096 }
 0x1d8   : > { %v5359_v63 = vpop.xlane.xlu1 %1640  ;;  %v1606_v3 = vpop.xlane.xlu0 %1605 }
 0x1d9   : > { %v1871_v24 = vunpack.c.l.b16 %v1606_v3  ;;  %v1872_v56 = vunpack.c.h.b16 %v1606_v3 }
 0x1db   : > { %785 = vadd.xlane.f32.xlu1 %v784_v17  ;;  %v2419_v34 = vrot.slane %v1871_v24, %v4378_v49  ;;  %v2424_v37 = vrot.slane %v1872_v56, %v4381_v50  ;;  %v455_v24 = vunpack.c.l.bf16 %v5384_v48 }
 0x1dc   : > { %1660 = vmax.xlane.bf16.xlu0 %v1658_v15  ;;  %v813_v2 = vpop.xlane.xlu1 %812  ;;  %v810_v25 = vpop.xlane.xlu0 %809  ;;  %v456_v15 = vunpack.c.h.bf16 %v5384_v48 }
 0x1dd   : > { %v961_v13 = vmul.f32 0.015625, %v813_v2  ;;  %v2420_v10 = vsel %vm1919_vm2, %v2419_v34, %v2415_v43  ;;  %v960_v29 = vmul.f32 0.015625, %v810_v25  ;;  %v4032_v43 = vld [vmem:[%s4180_s5 + $0x170] sm:$0xff]  }
 0x1de   : > { %v5374_v1 = vsel %vm1926_vm3, %v2424_v37, %v2420_v10  ;;  %v4033_v10 = vld [vmem:[%s4180_s5 + $0xf8] sm:$0xff]  }
 0x1df   : > { %1475 = vmax.xlane.bf16.xlu1 %v1473_v30  ;;  %v1030_v14 = vpack.c.bf16 %v961_v13, %v960_v29  ;;  %v835_v30 = vsel %vm459_vm0, %v456_v15, 0.0 }
 0x1e1   : > { %v2849_v5 = vunpack.c.l.b16 %v1030_v14  ;;  %v2850_v40 = vunpack.c.h.b16 %v1030_v14 }
 0x1e3   : > { %v3436_v8 = vrot.slane %v2849_v5, %v4525_v38  ;;  %v3441_v32 = vrot.slane %v2850_v40, %v4541_v20  ;;  %v1588_v40 = vsel %vm459_vm0, %v4032_v43, 4286644096 }
 0x1e4   : > { %788 = vadd.xlane.f32.xlu0 %v787_v42  ;;  %v1421_v4 = vpop.xlane.xlu1 %1420  ;;  %v1381_v39 = vpop.xlane.xlu0 %1380 }
 0x1e5   : > { %v1797_v31 = vunpack.c.l.b16 %v1421_v4  ;;  %v1798_v6 = vunpack.c.h.b16 %v1421_v4  ;;  %v3437_v27 = vsel %vm1933_vm4, %v3436_v8, %v5297_v41  ;;  %v1781_v12 = vunpack.c.l.b16 %v1381_v39 }
 0x1e6   : > { %v1782_v17 = vunpack.c.h.b16 %v1381_v39  ;;  %v5389_v21 = vsel %vm1940_vm5, %v3441_v32, %v3437_v27  ;;  %v1885_v8 = vunpack.c.l.b16 %v5359_v63  ;;  %v1886_v32 = vunpack.c.h.b16 %v5359_v63 }
 0x1e7   : > { %v2054_v9 = vrot.slane %v1797_v31, %v4554_v61  ;;  %v2059_v23 = vrot.slane %v1798_v6, %v4557_v22  ;;  %1550 = vmax.xlane.bf16.xlu1 %v1548_v52  ;;  %v1960_v3 = vrot.slane %v1781_v12, %v4554_v61  ;;  %v1513_v52 = vsel %vm459_vm0, %v4033_v10, 4286644096  ;;  %v5422_v31 = vld [vmem:[%s4180_s5 + $0x1b8] sm:$0xff]  }
 0x1e8   : > { %v1967_v57 = vrot.slane %v1782_v17, %v4557_v22  ;;  %1625 = vmax.xlane.bf16.xlu0 %v1623_v60  ;;  %v441_v63 = vunpack.c.l.bf16 %v5422_v31  ;;  %v2493_v12 = vrot.slane %v1886_v32, %v4388_v55  ;;  %v442_v10 = vunpack.c.h.bf16 %v5422_v31 }
 0x1e9   : > { %v2055_v41 = vsel %vm1961_vm8, %v2054_v9, %v5308_v53  ;;  %v1962_v34 = vsel %vm1961_vm8, %v1960_v3, %v5284_v16  ;;  %v832_v53 = vsel %vm459_vm0, %v455_v24, 0.0 }
 0x1ea   : > { %v5400_v56 = vsel %vm1968_vm9, %v2059_v23, %v2055_v41  ;;  %v5405_v37 = vsel %vm1968_vm9, %v1967_v57, %v1962_v34  ;;  %v790_v15 = vsel %vm459_vm0, %v441_v63, 0.0  ;;  %v4034_v41 = vld [vmem:[%s4180_s5 + $0x138] sm:$0xff]  }
 0x1ec   : > { %v1571_v2 = vpop.xlane.xlu1 %1570  ;;  %v1496_v33 = vpop.xlane.xlu0 %1495 }
 0x1ed   : > { %v1857_v13 = vunpack.c.l.b16 %v1571_v2  ;;  %v1858_v25 = vunpack.c.h.b16 %v1571_v2  ;;  %v1827_v29 = vunpack.c.l.b16 %v1496_v33  ;;  %v1828_v14 = vunpack.c.h.b16 %v1496_v33 }
 0x1ef   : > { %v2350_v45 = vrot.slane %v1857_v13, %v4525_v38  ;;  %v2355_v16 = vrot.slane %v1858_v25, %v4541_v20  ;;  %836 = vadd.xlane.f32.xlu1 %v835_v30  ;;  %v2202_v42 = vrot.slane %v1827_v29, %v4544_v18  ;;  %v2207_v5 = vrot.slane %v1828_v14, %v4550_v47 }
 0x1f0   : > { %833 = vadd.xlane.f32.xlu0 %v832_v53  ;;  %v768_v27 = vpop.xlane.xlu1 %767  ;;  %v1553_v53 = vsel %vm459_vm0, %v4034_v41, 4286644096 }
 0x1f1   : > { %v2351_v4 = vsel %vm1933_vm4, %v2350_v45, %v5328_v62  ;;  %v2203_v39 = vsel %vm6004_vm11, %v2202_v42, %v5313_v28  ;;  %v2489_v62 = vrot.slane %v1885_v8, %v4385_v51  ;;  %v1663_v51 = vsel %vm459_vm0, %v5293_v58, 4286644096 }
 0x1f2   : > { %v5425_v6 = vsel %vm1940_vm5, %v2355_v16, %v2351_v4  ;;  %v5430_v60 = vsel %vm6005_vm12, %v2207_v5, %v2203_v39  ;;  %v946_v55 = vmul.f32 0.015625, %v768_v27  ;;  %v5456_v16 = vld [vmem:[%s4180_s5 + $0x1f8] sm:$0xff]  }
 0x1f3   : > { %1590 = vmax.xlane.bf16.xlu1 %v1588_v40  ;;  %v2494_v24 = vsel %vm1912_vm1, %v2493_v12, %v2489_v62  ;;  %vm6006_vm1 = vmmov %vm6004_vm11 }
 0x1f4   : > { %1515 = vmax.xlane.bf16.xlu0 %v1513_v52  ;;  %v1646_v17 = vpop.xlane.xlu0 %1645  ;;  %v457_v52 = vunpack.c.l.bf16 %v5456_v16 }
 0x1f5   : > { %v1887_v9 = vunpack.c.l.b16 %v1646_v17  ;;  %v1888_v23 = vunpack.c.h.b16 %v1646_v17 }
 0x1f6   : > { %v838_v41 = vsel %vm459_vm0, %v457_v52, 0.0 }
 0x1f7   : > { %v2498_v3 = vrot.slane %v1887_v9, %v4378_v49  ;;  %v2503_v57 = vrot.slane %v1888_v23, %v4381_v50 }
 0x1f8   : > { %v1461_v28 = vpop.xlane.xlu1 %1460  ;;  %v771_v30 = vpop.xlane.xlu0 %770 }
 0x1f9   : > { %v1813_v34 = vunpack.c.l.b16 %v1461_v28  ;;  %v1814_v2 = vunpack.c.h.b16 %v1461_v28  ;;  %v2499_v43 = vsel %vm1919_vm2, %v2498_v3, %v2494_v24  ;;  %v947_v13 = vmul.f32 0.015625, %v771_v30  ;;  %vm6007_vm2 = vmmov %vm6005_vm12 }
 0x1fa   : > { %v5444_v49 = vsel %vm1926_vm3, %v2503_v57, %v2499_v43  ;;  %v1628_v57 = vsel %vm459_vm0, %v5337_v26, 4286644096  ;;  %vm6008_vm3 = vmmov %vm6006_vm1  ;;  %v458_v24 = vunpack.c.h.bf16 %v5456_v16  ;;  %v3929_v26 = vld [vmem:[%s5886_s1] sm:$0xff]   ;;  %v4035_v43 = vld [vmem:[%s4180_s5 + $0x178] sm:$0xff]   ;;  %s3676_s5 = sshll.u32 %s191_s30, 3 }
 0x1fb   : > { %v2133_v50 = vrot.slane %v1813_v34, %v4554_v61  ;;  %v2138_v25 = vrot.slane %v1814_v2, %v4557_v22  ;;  %791 = vadd.xlane.f32.xlu1 %v790_v15  ;;  %v1023_v33 = vpack.c.bf16 %v947_v13, %v946_v55  ;;  %vm6009_vm11 = vmmov %vm6007_vm2  ;;  %s193_s9 = scalar_lea.vmem [#allocation2], %s3676_s5 }
 0x1fc   : > { %1665 = vmax.xlane.bf16.xlu0 %v1663_v51  ;;  %v841_v13 = vsel %vm459_vm0, %v458_v24, 0.0  ;;  %vm6010_vm12 = vmmov %vm6006_vm1  ;;  %v3934_v24 = vld [vmem:[%s5886_s1 + $0x20] sm:$0xff]   ;;  %s3613_s10 = sshll.u32 %s193_s9, 4  ;;  %s5845_s10 = int_to_ptr.vmem [resolvable:$true] %s3613_s10 }
 0x1fd   : > { %v2134_v58 = vsel %vm1961_vm8, %v2133_v50, %v5357_v36  ;;  %v2835_v14 = vunpack.c.l.b16 %v1023_v33  ;;  %v2836_v45 = vunpack.c.h.b16 %v1023_v33  ;;  %v793_v36 = vsel %vm459_vm0, %v442_v10, 0.0  ;;  %s4036_s19 = scalar_lea.vmem %s5845_s10, 128  ;;  %p4043_p0 = scmp.lt.s32.totalorder %s5845_s10, %s4041_s22 }
 0x1fe   : > { %v5453_v29 = vsel %vm1968_vm9, %v2138_v25, %v2134_v58  ;;  %v3930_v25 = vld [vmem:[%s5886_s1 + $0x8] sm:$0xff]   ;;  %v1593_v10 = vsel %vm459_vm0, %v4035_v43, 4286644096  ;;  %p4037_p11 = scmp.ne.s32.totalorder %s5845_s10, %s4036_s19  ;;  %p4044_p1 = scmp.lt.s32.totalorder %s4042_s23, %s4036_s19 }
 0x1ff   : > { %1555 = vmax.xlane.bf16.xlu1 %v1553_v53  ;;  %v3367_v42 = vrot.slane %v2835_v14, %v4544_v18  ;;  %v3372_v5 = vrot.slane %v2836_v45, %v4550_v47 }
 0x200   : > { %v1536_v40 = vpop.xlane.xlu1 %1535  ;;  %v1611_v4 = vpop.xlane.xlu0 %1610  ;;  %p4038_p12 = pnand %p4037_p11, %p4166_p5  ;;  %p4045_p2 = por %p4044_p1, %p4043_p0 }
 0x201   : > { %v1843_v8 = vunpack.c.l.b16 %v1536_v40  ;;  %v1844_v32 = vunpack.c.h.b16 %v1536_v40  ;;  %v3368_v39 = vsel %vm6006_vm1, %v3367_v42, %v5342_v46  ;;  %v1873_v27 = vunpack.c.l.b16 %v1611_v4  ;;  %vm6011_vm1 = vmmov %vm6007_vm2 }
 0x202   : > { %v1874_v63 = vunpack.c.h.b16 %v1611_v4  ;;  %v5465_v62 = vsel %vm6007_vm2, %v3372_v5, %v3368_v39  ;;  %v1668_v5 = vsel %vm459_vm0, %v5384_v48, 4286644096  ;;  %v3931_v4 = vld [vmem:[%s5886_s1 + $0x10] sm:$0xff]   ;;  %vm6012_vm2 = vcmask 720512   ;;  %p4039_p13 = pneg %p4038_p12 }
 0x203   : > { %v2281_v12 = vrot.slane %v1843_v8, %v4544_v18  ;;  %v2286_v17 = vrot.slane %v1844_v32, %v4550_v47  ;;  %v2429_v9 = vrot.slane %v1873_v27, %v4525_v38 }
 0x204   : > { %v2434_v23 = vrot.slane %v1874_v63, %v4541_v20  ;;  %794 = vadd.xlane.f32.xlu0 %v793_v36  ;;  %v819_v3 = vpop.xlane.xlu1 %818  ;;  %v816_v15 = vpop.xlane.xlu0 %815  ;;  %p4046_p3 = pnand %p4045_p2, %p4039_p13 }
 0x205   : > { %v2282_v46 = vsel %vm6008_vm3, %v2281_v12, %v5352_v7  ;;  %v963_v28 = vmul.f32 0.015625, %v819_v3  ;;  %v2430_v2 = vsel %vm1933_vm4, %v2429_v9, %v5374_v1  ;;  %v962_v30 = vmul.f32 0.015625, %v816_v15 }
 0x206   : > { %v5478_v34 = vsel %vm6009_vm11, %v2286_v17, %v2282_v46  ;;  %v5486_v51 = vsel %vm1940_vm5, %v2434_v23, %v2430_v2  ;;  %v4100_v7 = vmov 0.0   ;;  %vm6013_vm3 = vcmask 786112   ;;  %vm6014_vm11 = vmmov %vm6012_vm2  ;;  %v3932_v17 = vld [vmem:[%s5886_s1 + $0x18] sm:$0xff]   ;;  %v3933_v23 = vld [vmem:[%s5887_s2] sm:$0xff]  }
 0x207   : > { %1630 = vmax.xlane.bf16.xlu1 %v1628_v57  ;;  %3804 = vmatprep.subr.bf16.mxu1 %v4100_v7  ;;  %v1031_v55 = vpack.c.bf16 %v963_v28, %v962_v30  ;;  %v1673_v3 = vsel %vm459_vm0, %v5456_v16, 4286644096 }
 0x208   : > { %839 = vadd.xlane.f32.xlu0 %v838_v41  ;;  %3805 = vmatpush3.bf16.msra.mxu1 %v3929_v26 }
 0x209   : > { %3806 = vmatprep.subr.bf16.mxu1 %v4100_v7  ;;  %3784 = vmatprep.subr.bf16.mxu0 %v4100_v7  ;;  %v2851_v1 = vunpack.c.l.b16 %v1031_v55  ;;  %v2852_v50 = vunpack.c.h.b16 %v1031_v55 }
 0x20a   : > { %3785 = vmatpush3.bf16.msra.mxu0 %v3933_v23 }
 0x20b   : > { %v3446_v33 = vrot.slane %v2851_v1, %v4544_v18  ;;  %v3451_v53 = vrot.slane %v2852_v50, %v4550_v47  ;;  %3786 = vmatprep.subr.bf16.mxu0 %v4100_v7  ;;  %v3936_v1 = vld [vmem:[%s5886_s1 + $0x28] sm:$0xff]  }
 0x20c   : > { %842 = vadd.xlane.f32.xlu0 %v841_v13  ;;  %v1426_v58 = vpop.xlane.xlu1 %1425  ;;  %3807 = vmatpush3.bf16.msra.mxu1 %v3930_v25 }
 0x20d   : > { %v1799_v14 = vunpack.c.l.b16 %v1426_v58  ;;  %v1800_v45 = vunpack.c.h.b16 %v1426_v58  ;;  %v1386_v42 = vpop.xlane.xlu0 %1385  ;;  %3808 = vmatprep.subr.bf16.mxu1 %v4100_v7  ;;  %v3447_v40 = vsel %vm6010_vm12, %v3446_v33, %v5389_v21  ;;  %vm6015_vm12 = vmmov %vm6013_vm3  ;;  %v3938_v58 = vld [vmem:[%s5886_s1 + $0x30] sm:$0xff]  }
 0x20e   : > { %v1783_v8 = vunpack.c.l.b16 %v1386_v42  ;;  %v1784_v32 = vunpack.c.h.b16 %v1386_v42  ;;  %v5508_v36 = vsel %vm6011_vm1, %v3451_v53, %v3447_v40 }
 0x20f   : > { %v2064_v52 = vrot.slane %v1799_v14, %v4571_v59  ;;  %v2069_v39 = vrot.slane %v1800_v45, %v4574_v54  ;;  %1595 = vmax.xlane.bf16.xlu1 %v1593_v10  ;;  %v3939_v10 = vld [vmem:[%s5887_s2 + $0x18] sm:$0xff]  }
 0x210   : > { %v1974_v48 = vrot.slane %v1783_v8, %v4571_v59  ;;  %v1981_v27 = vrot.slane %v1784_v32, %v4574_v54  ;;  %1670 = vmax.xlane.bf16.xlu0 %v1668_v5  ;;  %3809 = vmatpush3.bf16.msra.mxu1 %v3931_v4 }
 0x211   : > { %v2065_v21 = vsel %vm6012_vm2, %v2064_v52, %v5400_v56  ;;  %3810 = vmatprep.subr.bf16.mxu1 %v4100_v7 }
 0x212   : > { %v5518_v63 = vsel %vm6013_vm3, %v2069_v39, %v2065_v21  ;;  %v1976_v12 = vsel %vm6014_vm11, %v1974_v48, %v5405_v37  ;;  %v1633_v37 = vsel %vm459_vm0, %v5422_v31, 4286644096  ;;  %v3935_v31 = vld [vmem:[%s5887_s2 + $0x8] sm:$0xff]   ;;  %vm6016_vm0 = vcmask 458112   ;;  %vm6020_vm11 = vmmov %vm6011_vm1 }
 0x213   : > { %v5526_v9 = vsel %vm6015_vm12, %v1981_v27, %v1976_v12  ;;  %3787 = vmatpush3.bf16.msra.mxu0 %v3935_v31  ;;  %v3941_v27 = vld [vmem:[%s5887_s2 + $0x20] sm:$0xff]   ;;  %vm6021_vm12 = vcmask 851712  }
 0x214   : > { %v1576_v56 = vpop.xlane.xlu1 %1575  ;;  %3811 = vmatpush3.bf16.msra.mxu1 %v3932_v17  ;;  %3788 = vmatprep.subr.bf16.mxu0 %v4100_v7 }
 0x215   : > { %v1859_v57 = vunpack.c.l.b16 %v1576_v56  ;;  %v1860_v46 = vunpack.c.h.b16 %v1576_v56  ;;  %v1501_v28 = vpop.xlane.xlu0 %1500  ;;  %3812 = vmatprep.subr.bf16.mxu1 %v4100_v7  ;;  %v3942_v56 = vld [vmem:[%s5887_s2 + $0x28] sm:$0xff]  }
 0x216   : > { %v1829_v15 = vunpack.c.l.b16 %v1501_v28  ;;  %v1830_v41 = vunpack.c.h.b16 %v1501_v28 }
 0x217   : > { %v2360_v16 = vrot.slane %v1859_v57, %v4544_v18  ;;  %v2365_v2 = vrot.slane %v1860_v46, %v4550_v47  ;;  %1675 = vmax.xlane.bf16.xlu1 %v1673_v3 }
 0x218   : > { %v2212_v30 = vrot.slane %v1829_v15, %v4554_v61  ;;  %v2217_v26 = vrot.slane %v1830_v41, %v4557_v22  ;;  %1635 = vmax.xlane.bf16.xlu0 %v1633_v37  ;;  %3813 = vmatpush3.bf16.msra.mxu1 %v3934_v24  ;;  %v774_v25 = vpop.xlane.xlu1 %773 }
 0x219   : > { %v2361_v55 = vsel %vm6016_vm0, %v2360_v16, %v5425_v6  ;;  %3814 = vmatprep.subr.bf16.mxu1 %v4100_v7  ;;  %v3937_v6 = vld [vmem:[%s5887_s2 + $0x10] sm:$0xff]   ;;  %v948_v32 = vmul.f32 0.015625, %v774_v25  ;;  %v3944_v25 = vld [vmem:[%s5887_s2 + $0x38] sm:$0xff]  }
 0x21a   : > { %v5551_v43 = vsel %vm6011_vm1, %v2365_v2, %v2361_v55  ;;  %v2213_v13 = vsel %vm1961_vm8, %v2212_v30, %v5430_v60  ;;  %3789 = vmatpush3.bf16.msra.mxu0 %v3937_v6  ;;  %v3943_v55 = vld [vmem:[%s5887_s2 + $0x30] sm:$0xff]  }
 0x21b   : > { %v5560_v50 = vsel %vm1968_vm9, %v2217_v26, %v2213_v13  ;;  %3790 = vmatprep.subr.bf16.mxu0 %v4100_v7 }
 0x21c   : > { %3815 = vmatpush3.bf16.msra.mxu1 %v3936_v1 }
 0x21d   : > { %v1651_v33 = vpop.xlane.xlu0 %1650  ;;  %3816 = vmatprep.subr.bf16.mxu1 %v4100_v7 }
 0x21e   : > { %v1889_v60 = vunpack.c.l.b16 %v1651_v33  ;;  %v1890_v53 = vunpack.c.h.b16 %v1651_v33  ;;  %3791 = vmatpush3.bf16.msra.mxu0 %v3939_v10 }
 0x21f   : > { %3792 = vmatprep.subr.bf16.mxu0 %v4100_v7 }
 0x220   : > { %v2508_v14 = vrot.slane %v1889_v60, %v4525_v38  ;;  %v2513_v45 = vrot.slane %v1890_v53, %v4541_v20  ;;  %v1466_v42 = vpop.xlane.xlu1 %1465  ;;  %3817 = vmatpush3.bf16.msra.mxu1 %v3938_v58  ;;  %v3940_v38 = vld [vmem:[%s5886_s1 + $0x38] sm:$0xff]  }
 0x221   : > { %v1815_v5 = vunpack.c.l.b16 %v1466_v42  ;;  %v1816_v40 = vunpack.c.h.b16 %v1466_v42  ;;  %v777_v8 = vpop.xlane.xlu0 %776  ;;  %3818 = vmatprep.subr.bf16.mxu1 %v4100_v7 }
 0x222   : > { %v2509_v4 = vsel %vm1933_vm4, %v2508_v14, %v5444_v49  ;;  %v949_v52 = vmul.f32 0.015625, %v777_v8  ;;  %vm6017_vm4 = vmmov %vm6012_vm2  ;;  %3793 = vmatpush3.bf16.msra.mxu0 %v3941_v27 }
 0x223   : > { %v5583_v20 = vsel %vm1940_vm5, %v2513_v45, %v2509_v4  ;;  %v2143_v39 = vrot.slane %v1815_v5, %v4571_v59  ;;  %v2148_v48 = vrot.slane %v1816_v40, %v4574_v54  ;;  %vm6018_vm2 = vmmov %vm6013_vm3  ;;  %vm4101_vm5 = vmmov 0   ;;  %3794 = vmatprep.subr.bf16.mxu0 %v4100_v7 }
 0x224   : > { %v1024_v21 = vpack.c.bf16 %v949_v52, %v948_v32  ;;  %3819 = vmatpush3.bf16.msra.mxu1 %v3940_v38  ;;  %3820 = vmatprep.mubr.msk.bf16.mxu1 %vm4101_vm5, %v4100_v7  ;;  %vm6019_vm3 = vmmov %vm6016_vm0 }
 0x225   : > { %v2144_v49 = vsel %vm6017_vm4, %v2143_v39, %v5453_v29  ;;  %3800 = vmatprep.mubr.msk.bf16.mxu0 %vm4101_vm5, %v4100_v7  ;;  %vm6022_vm0 = vmmov %vm6017_vm4 }
 0x226   : > { %v5593_v12 = vsel %vm6018_vm2, %v2148_v48, %v2144_v49  ;;  %v2837_v17 = vunpack.c.l.b16 %v1024_v21  ;;  %v2838_v23 = vunpack.c.h.b16 %v1024_v21  ;;  %3795 = vmatpush3.bf16.msra.mxu0 %v3942_v56  ;;  %vm6023_vm1 = vmmov %vm6018_vm2 }
 0x227   : > { %3796 = vmatprep.subr.bf16.mxu0 %v4100_v7  ;;  %vm6024_vm4 = vmmov %vm6019_vm3 }
 0x228   : > { %v3377_v3 = vrot.slane %v2837_v17, %v4554_v61  ;;  %v3382_v29 = vrot.slane %v2838_v23, %v4557_v22  ;;  %v1541_v57 = vpop.xlane.xlu1 %1540  ;;  %vm6025_vm2 = vmmov %vm6020_vm11 }
 0x229   : > { %v1845_v46 = vunpack.c.l.b16 %v1541_v57  ;;  %v1846_v28 = vunpack.c.h.b16 %v1541_v57  ;;  %v1616_v37 = vpop.xlane.xlu0 %1615  ;;  %vm6026_vm5 = vmmov %vm6021_vm12 }
 0x22a   : > { %v3378_v15 = vsel %vm1961_vm8, %v3377_v3, %v5465_v62  ;;  %v1875_v41 = vunpack.c.l.b16 %v1616_v37  ;;  %v1876_v24 = vunpack.c.h.b16 %v1616_v37  ;;  %3797 = vmatpush3.bf16.msra.mxu0 %v3943_v55 }
 0x22b   : > { %v5607_v16 = vsel %vm1968_vm9, %v3382_v29, %v3378_v15  ;;  %v2291_v2 = vrot.slane %v1845_v46, %v4554_v61  ;;  %v2296_v31 = vrot.slane %v1846_v28, %v4557_v22  ;;  %3798 = vmatprep.subr.bf16.mxu0 %v4100_v7 }
 0x22c   : > { %v2439_v30 = vrot.slane %v1875_v41, %v4544_v18  ;;  %v2444_v26 = vrot.slane %v1876_v24, %v4550_v47  ;;  %v825_v7 = vpop.xlane.xlu1 %824 }
 0x22d   : > { %v2292_v62 = vsel %vm1961_vm8, %v2291_v2, %v5478_v34  ;;  %v5630_v33 = vpop.xlane.xlu0 %821 }
 0x22e   : > { %v5619_v13 = vsel %vm1968_vm9, %v2296_v31, %v2292_v62  ;;  %v2440_v1 = vsel %vm6019_vm3, %v2439_v30, %v5486_v51  ;;  %3799 = vmatpush3.bf16.msra.mxu0 %v3944_v25  ;;  %vm6027_vm3 = vmmov %vm6026_vm5 }
 0x22f   : > { %v5624_v6 = vsel %vm6020_vm11, %v2444_v26, %v2440_v1  ;;  %vm6030_vm11 = vmmov %vm6022_vm0 }
 0x234   : > { %v1431_v40 = vpop.xlane.xlu1 %1430 }
 0x235   : > { %v1391_v34 = vpop.xlane.xlu0 %1390  ;;  %v1801_v57 = vunpack.c.l.b16 %v1431_v40  ;;  %v1802_v46 = vunpack.c.h.b16 %v1431_v40 }
 0x236   : > { %v1785_v60 = vunpack.c.l.b16 %v1391_v34  ;;  %v1786_v53 = vunpack.c.h.b16 %v1391_v34 }
 0x237   : > { %v2079_v37 = vrot.slane %v1802_v46, %v4580_v44 }
 0x238   : > { %v1988_v58 = vrot.slane %v1785_v60, %v4577_v19  ;;  %v1995_v51 = vrot.slane %v1786_v53, %v4580_v44 }
 0x23a   : > { %v1990_v10 = vsel %vm6021_vm12, %v1988_v58, %v5526_v9  ;;  %vm6031_vm12 = vmmov %vm6023_vm1 }
 0x23b   : > { %v1997_v14 = vsel %vm1996_vm13, %v1995_v51, %v1990_v10 }
 0x23c   : > { %v5644_v38 = vpop.xlane.xlu1 %1580 }
 0x23d   : > { %v1506_v45 = vpop.xlane.xlu0 %1505 }
 0x23e   : > { %v1831_v42 = vunpack.c.l.b16 %v1506_v45  ;;  %v1832_v5 = vunpack.c.h.b16 %v1506_v45 }
 0x240   : > { %v2222_v8 = vrot.slane %v1831_v42, %v4571_v59  ;;  %v2227_v32 = vrot.slane %v1832_v5, %v4574_v54  ;;  %v780_v49 = vpop.xlane.xlu1 %779 }
 0x242   : > { %v2223_v4 = vsel %vm6022_vm0, %v2222_v8, %v5560_v50 }
 0x243   : > { %v5642_v52 = vsel %vm6023_vm1, %v2227_v32, %v2223_v4 }
 0x245   : > { %v1656_v9 = vpop.xlane.xlu0 %1655 }
 0x246   : > { %v1891_v39 = vunpack.c.l.b16 %v1656_v9  ;;  %v1892_v48 = vunpack.c.h.b16 %v1656_v9 }
 0x248   : > { %v2518_v27 = vrot.slane %v1891_v39, %v4544_v18  ;;  %v2523_v21 = vrot.slane %v1892_v48, %v4550_v47  ;;  %v1471_v50 = vpop.xlane.xlu1 %1470  ;;  %v2074_v18 = vrot.slane %v1801_v57, %v4577_v19 }
 0x249   : > { %v783_v56 = vpop.xlane.xlu0 %782  ;;  %v1817_v10 = vunpack.c.l.b16 %v1471_v50  ;;  %v1818_v45 = vunpack.c.h.b16 %v1471_v50 }
 0x24a   : > { %v2519_v17 = vsel %vm6024_vm4, %v2518_v27, %v5583_v20  ;;  %v2075_v15 = vsel %vm6026_vm5, %v2074_v18, %v5518_v63  ;;  %vm6036_vm5 = vcmask 1044484  }
 0x24b   : > { %v5651_v23 = vsel %vm6025_vm2, %v2523_v21, %v2519_v17  ;;  %v2080_v62 = vsel %vm1996_vm13, %v2079_v37, %v2075_v15  ;;  %v2153_v5 = vrot.slane %v1817_v10, %v4577_v19  ;;  %v2158_v8 = vrot.slane %v1818_v45, %v4580_v44 }
 0x24c   : > { %v965_v21 = vmul.f32 0.015625, %v825_v7  ;;  %v964_v17 = vmul.f32 0.015625, %v5630_v33 }
 0x24d   : > { %v2154_v4 = vsel %vm6027_vm3, %v2153_v5, %v5593_v12 }
 0x24e   : > { %v2159_v50 = vsel %vm1996_vm13, %v2158_v8, %v2154_v4  ;;  %v1032_v37 = vpack.c.bf16 %v965_v21, %v964_v17 }
 0x250   : > { %v5653_v3 = vpop.xlane.xlu1 %1545  ;;  %v2853_v15 = vunpack.c.l.b16 %v1032_v37 }
 0x251   : > { %v5655_v29 = vpop.xlane.xlu0 %1620 }
 0x252   : > { %v3456_v33 = vrot.slane %v2853_v15, %v4554_v61 }
 0x254   : > { %v5657_v28 = vpop.xlane.xlu1 %830 }
 0x255   : > { %v5660_v47 = vpop.xlane.xlu0 %827  ;;  %v967_v4 = vmul.f32 0.015625, %v5657_v28 }
 0x25c   : > { %v1436_v20 = vpop.xlane.xlu1 %1435 }
 0x25d   : > { %v1803_v41 = vunpack.c.l.b16 %v1436_v20  ;;  %v1804_v24 = vunpack.c.h.b16 %v1436_v20  ;;  %v1396_v2 = vpop.xlane.xlu0 %1395 }
 0x25e   : > { %v1787_v31 = vunpack.c.l.b16 %v1396_v2  ;;  %v1788_v30 = vunpack.c.h.b16 %v1396_v2  ;;  %v950_v2 = vmul.f32 0.015625, %v780_v49  ;;  %v1862_v49 = vunpack.c.h.b16 %v5644_v38 }
 0x25f   : > { %v2084_v26 = vrot.slane %v1803_v41, %v5951_v0  ;;  %v2089_v55 = vrot.slane %v1804_v24, %v5986_v11  ;;  %v951_v41 = vmul.f32 0.015625, %v783_v56 }
 0x260   : > { %v2002_v1 = vrot.slane %v1787_v31, %v5951_v0  ;;  %v2009_v25 = vrot.slane %v1788_v30, %v5986_v11  ;;  %v2854_v31 = vunpack.c.h.b16 %v1032_v37 }
 0x261   : > { %v2085_v34 = vsel %vm2003_vm14, %v2084_v26, %v2080_v62  ;;  %v1025_v30 = vpack.c.bf16 %v951_v41, %v950_v2  ;;  %v1861_v62 = vunpack.c.l.b16 %v5644_v38  ;;  %v966_v38 = vmul.f32 0.015625, %v5660_v47 }
 0x262   : > { %v2090_v60 = vsel %vm2010_vm15, %v2089_v55, %v2085_v34  ;;  %v2004_v63 = vsel %vm2003_vm14, %v2002_v1, %v1997_v14  ;;  %v3457_v34 = vsel %vm1961_vm8, %v3456_v33, %v5508_v36  ;;  %v3461_v56 = vrot.slane %v2854_v31, %v4557_v22 }
 0x263   : > { %v2011_v53 = vsel %vm2010_vm15, %v2009_v25, %v2004_v63  ;;  %v1847_v63 = vunpack.c.l.b16 %v5653_v3  ;;  %v2370_v45 = vrot.slane %v1861_v62, %v4554_v61  ;;  %v2375_v47 = vrot.slane %v1862_v49, %v4557_v22 }
 0x264   : > { %v2566_v58 = vsel %vm2565_vm6, %v2090_v60, %v2011_v53  ;;  %v5675_v51 = vpop.xlane.xlu1 %1585  ;;  %v2839_v60 = vunpack.c.l.b16 %v1025_v30  ;;  %vm6028_vm6 = vmmov %vm6027_vm3  ;;  %v1033_v37 = vpack.c.bf16 %v967_v4, %v966_v38  ;;  %v3462_v33 = vsel %vm1968_vm9, %v3461_v56, %v3457_v34 }
 0x265   : > { %v1511_v40 = vpop.xlane.xlu0 %1510  ;;  %v2371_v28 = vsel %vm1961_vm8, %v2370_v45, %v5551_v43 }
 0x266   : > { %v1833_v7 = vunpack.c.l.b16 %v1511_v40  ;;  %v1834_v26 = vunpack.c.h.b16 %v1511_v40  ;;  %v2855_v34 = vunpack.c.l.b16 %v1033_v37  ;;  %v2856_v56 = vunpack.c.h.b16 %v1033_v37 }
 0x268   : > { %v786_v42 = vpop.xlane.xlu1 %785  ;;  %v2232_v1 = vrot.slane %v1833_v7, %v4577_v19  ;;  %v2237_v53 = vrot.slane %v1834_v26, %v4580_v44 }
 0x26a   : > { %v2233_v5 = vsel %vm6028_vm6, %v2232_v1, %v5642_v52  ;;  %v2301_v52 = vrot.slane %v1847_v63, %v4571_v59  ;;  %v2376_v1 = vsel %vm1968_vm9, %v2375_v47, %v2371_v28  ;;  %v1863_v63 = vunpack.c.l.b16 %v5675_v51 }
 0x26b   : > { %v2238_v17 = vsel %vm1996_vm13, %v2237_v53, %v2233_v5  ;;  %vm2577_vm6 = vcmask 1047559  }
 0x26d   : > { %v5681_v9 = vpop.xlane.xlu0 %1660 }
 0x270   : > { %v1476_v32 = vpop.xlane.xlu1 %1475 }
 0x271   : > { %v1819_v14 = vunpack.c.l.b16 %v1476_v32  ;;  %v1820_v39 = vunpack.c.h.b16 %v1476_v32  ;;  %v789_v12 = vpop.xlane.xlu0 %788  ;;  %v2840_v32 = vunpack.c.h.b16 %v1025_v30  ;;  %v2302_v30 = vsel %vm6030_vm11, %v2301_v52, %v5619_v13 }
 0x272   : > { %v1893_v52 = vunpack.c.l.b16 %v5681_v9 }
 0x273   : > { %v2163_v48 = vrot.slane %v1819_v14, %v5951_v0  ;;  %v2168_v27 = vrot.slane %v1820_v39, %v5986_v11  ;;  %v952_v14 = vmul.f32 0.015625, %v786_v42  ;;  %v3387_v39 = vrot.slane %v2839_v60, %v4571_v59 }
 0x274   : > { %v1877_v42 = vunpack.c.l.b16 %v5655_v29 }
 0x275   : > { %v2164_v57 = vsel %vm2003_vm14, %v2163_v48, %v2159_v50  ;;  %v1848_v48 = vunpack.c.h.b16 %v5653_v3 }
 0x276   : > { %v2169_v46 = vsel %vm2010_vm15, %v2168_v27, %v2164_v57 }
 0x277   : > { %v2568_v18 = vsel %vm2567_vm7, %v2169_v46, %v2566_v58  ;;  %v953_v58 = vmul.f32 0.015625, %v789_v12  ;;  %v3392_v46 = vrot.slane %v2840_v32, %v4574_v54  ;;  %v1878_v12 = vunpack.c.h.b16 %v5655_v29  ;;  %vm6029_vm7 = vmmov %vm6022_vm0 }
 0x278   : > { %v5692_v24 = vpop.xlane.xlu1 %1550  ;;  %v3388_v41 = vsel %vm6029_vm7, %v3387_v39, %v5607_v16  ;;  %v2306_v2 = vrot.slane %v1848_v48, %v4574_v54  ;;  %v2449_v16 = vrot.slane %v1877_v42, %v4554_v61  ;;  %vm6033_vm0 = vmmov %vm6027_vm3  ;;  %v3471_v39 = vrot.slane %v2856_v56, %v4574_v54 }
 0x279   : > { %v5690_v20 = vpop.xlane.xlu0 %1625  ;;  %v1026_v50 = vpack.c.bf16 %v953_v58, %v952_v14  ;;  %v1849_v57 = vunpack.c.l.b16 %v5692_v24  ;;  %v1850_v43 = vunpack.c.h.b16 %v5692_v24  ;;  %v3393_v24 = vsel %vm6031_vm12, %v3392_v46, %v3388_v41  ;;  %vm6034_vm4 = vmmov %vm6033_vm0 }
 0x27a   : > { %v3466_v14 = vrot.slane %v2855_v34, %v4571_v59  ;;  %vm6035_vm2 = vmmov %vm6029_vm7 }
 0x27b   : > { %v2841_v26 = vunpack.c.l.b16 %v1026_v50  ;;  %v2311_v29 = vrot.slane %v1849_v57, %v4577_v19  ;;  %v2842_v53 = vunpack.c.h.b16 %v1026_v50  ;;  %v2316_v58 = vrot.slane %v1850_v43, %v4580_v44  ;;  %vm6037_vm3 = vmmov %vm6035_vm2 }
 0x27c   : > { %v837_v25 = vpop.xlane.xlu1 %836  ;;  %vm6040_vm12 = vmmov %vm6033_vm0 }
 0x27d   : > { %v834_v55 = vpop.xlane.xlu0 %833  ;;  %v969_v60 = vmul.f32 0.015625, %v837_v25  ;;  %v3397_v45 = vrot.slane %v2841_v26, %v4577_v19  ;;  %v3402_v28 = vrot.slane %v2842_v53, %v4580_v44 }
 0x27e   : > { %v968_v49 = vmul.f32 0.015625, %v834_v55 }
 0x27f   : > { %v3398_v57 = vsel %vm6034_vm4, %v3397_v45, %v3393_v24 }
 0x280   : > { %v1034_v32 = vpack.c.bf16 %v969_v60, %v968_v49 }
 0x284   : > { %v5706_v40 = vpop.xlane.xlu1 %1590 }
 0x285   : > { %v1516_v10 = vpop.xlane.xlu0 %1515  ;;  %v1865_v41 = vunpack.c.l.b16 %v5706_v40  ;;  %v1866_v56 = vunpack.c.h.b16 %v5706_v40  ;;  %v1880_v40 = vunpack.c.h.b16 %v5690_v20 }
 0x286   : > { %v1835_v8 = vunpack.c.l.b16 %v1516_v10  ;;  %v1836_v36 = vunpack.c.h.b16 %v1516_v10 }
 0x288   : > { %v2242_v27 = vrot.slane %v1835_v8, %v5951_v0  ;;  %v2247_v21 = vrot.slane %v1836_v36, %v5986_v11  ;;  %v792_v31 = vpop.xlane.xlu1 %791  ;;  %v2450_v36 = vsel %vm1961_vm8, %v2449_v16, %v5624_v6  ;;  %v2380_v6 = vrot.slane %v1863_v63, %v4571_v59 }
 0x289   : > { %v954_v4 = vmul.f32 0.015625, %v792_v31  ;;  %v2528_v31 = vrot.slane %v1893_v52, %v4554_v61  ;;  %v3403_v16 = vsel %vm1996_vm13, %v3402_v28, %v3398_v57  ;;  %v2464_v52 = vrot.slane %v1880_v40, %v4574_v54 }
 0x28a   : > { %v2243_v3 = vsel %vm2003_vm14, %v2242_v27, %v2238_v17 }
 0x28b   : > { %v2248_v15 = vsel %vm2010_vm15, %v2247_v21, %v2243_v3  ;;  %v1864_v21 = vunpack.c.h.b16 %v5675_v51  ;;  %v2857_v3 = vunpack.c.l.b16 %v1034_v32  ;;  %v3467_v51 = vsel %vm6035_vm2, %v3466_v14, %v3462_v33 }
 0x28c   : > { %v2570_v7 = vsel %vm2569_vm10, %v2248_v15, %v2568_v18  ;;  %v5740_v18 = vrot.slane %v1878_v12, %v4557_v22  ;;  %vm6032_vm10 = vmmov %vm6023_vm1  ;;  %vm2575_vm1 = vcmask 1046534   ;;  %v1894_v15 = vunpack.c.h.b16 %v5681_v9 }
 0x28d   : > { %v5734_v62 = vpop.xlane.xlu0 %1665  ;;  %v2307_v13 = vsel %vm6032_vm10, %v2306_v2, %v2302_v30  ;;  %v2385_v43 = vrot.slane %v1864_v21, %v4574_v54  ;;  %v1879_v33 = vunpack.c.l.b16 %v5690_v20  ;;  %v2858_v9 = vunpack.c.h.b16 %v1034_v32  ;;  %vm6038_vm7 = vmmov %vm6032_vm10 }
 0x28e   : > { %v2312_v25 = vsel %vm6033_vm0, %v2311_v29, %v2307_v13  ;;  %v2381_v29 = vsel %vm6037_vm3, %v2380_v6, %v2376_v1  ;;  %v2533_v61 = vrot.slane %v1894_v15, %v4557_v22  ;;  %v2390_v13 = vrot.slane %v1865_v41, %v4577_v19  ;;  %vm6039_vm11 = vmmov %vm6038_vm7 }
 0x28f   : > { %v2317_v17 = vsel %vm1996_vm13, %v2316_v58, %v2312_v25  ;;  %v2529_v63 = vsel %vm1961_vm8, %v2528_v31, %v5651_v23  ;;  %v1895_v53 = vunpack.c.l.b16 %v5734_v62  ;;  %v3472_v25 = vsel %vm6038_vm7, %v3471_v39, %v3467_v51  ;;  %vm6041_vm8 = vmmov %vm6033_vm0 }
 0x290   : > { %v1556_v10 = vpop.xlane.xlu1 %1555  ;;  %v2386_v22 = vsel %vm6039_vm11, %v2385_v43, %v2381_v29  ;;  %v2395_v14 = vrot.slane %v1866_v56, %v4580_v44  ;;  %v1896_v39 = vunpack.c.h.b16 %v5734_v62  ;;  %vm6043_vm10 = vmmov %vm6035_vm2  ;;  %vm6044_vm0 = vcmask 1045509  }
 0x291   : > { %v1851_v55 = vunpack.c.l.b16 %v1556_v10  ;;  %v1852_v5 = vunpack.c.h.b16 %v1556_v10  ;;  %v795_v8 = vpop.xlane.xlu0 %794  ;;  %v2538_v20 = vrot.slane %v1895_v53, %v4571_v59  ;;  %vm6045_vm4 = vmmov %vm6038_vm7 }
 0x292   : > { %v955_v38 = vmul.f32 0.015625, %v795_v8 }
 0x293   : > { %v2321_v48 = vrot.slane %v1851_v55, %v5951_v0  ;;  %v2326_v27 = vrot.slane %v1852_v5, %v5986_v11  ;;  %v3481_v55 = vrot.slane %v2858_v9, %v4580_v44  ;;  %v2459_v5 = vrot.slane %v1879_v33, %v4571_v59 }
 0x294   : > { %v1027_v50 = vpack.c.bf16 %v955_v38, %v954_v4  ;;  %v2455_v4 = vsel %vm1968_vm9, %v5740_v18, %v2450_v36  ;;  %v2534_v38 = vsel %vm1968_vm9, %v2533_v61, %v2529_v63  ;;  %vm6042_vm9 = vmmov %vm6035_vm2 }
 0x295   : > { %v2322_v47 = vsel %vm2003_vm14, %v2321_v48, %v2317_v17  ;;  %v840_v42 = vpop.xlane.xlu0 %839  ;;  %v2460_v6 = vsel %vm6042_vm9, %v2459_v5, %v2455_v4  ;;  %vm6046_vm2 = vmmov %vm6045_vm4 }
 0x296   : > { %v2327_v46 = vsel %vm2010_vm15, %v2326_v27, %v2322_v47  ;;  %v2843_v12 = vunpack.c.l.b16 %v1027_v50  ;;  %v2844_v37 = vunpack.c.h.b16 %v1027_v50  ;;  %v970_v49 = vmul.f32 0.015625, %v840_v42 }
 0x297   : > { %v5765_v2 = vsel %vm6036_vm5, %v2327_v46, %v2570_v7  ;;  %v3476_v7 = vrot.slane %v2857_v3, %v4577_v19  ;;  %v2539_v46 = vsel %vm6043_vm10, %v2538_v20, %v2534_v38  ;;  %vm6047_vm5 = vmmov %vm6041_vm8 }
 0x298   : > { %v3407_v30 = vrot.slane %v2843_v12, %v5951_v0  ;;  %v3412_v26 = vrot.slane %v2844_v37, %v5986_v11  ;;  %v1631_v58 = vpop.xlane.xlu1 %1630  ;;  %v2543_v12 = vrot.slane %v1896_v39, %v4574_v54  ;;  %vm6048_vm3 = vmmov %vm6047_vm5 }
 0x299   : > { %v843_v60 = vpop.xlane.xlu0 %842  ;;  %v3477_v8 = vsel %vm6040_vm12, %v3476_v7, %v3472_v25  ;;  %v1881_v57 = vunpack.c.l.b16 %v1631_v58  ;;  %v1882_v15 = vunpack.c.h.b16 %v1631_v58 }
 0x29a   : > { %v971_v24 = vmul.f32 0.015625, %v843_v60  ;;  %v3408_v34 = vsel %vm2003_vm14, %v3407_v30, %v3403_v16  ;;  %v3482_v36 = vsel %vm1996_vm13, %v3481_v55, %v3477_v8  ;;  %v2465_v16 = vsel %vm6045_vm4, %v2464_v52, %v2460_v6 }
 0x29b   : > { %v3413_v1 = vsel %vm2010_vm15, %v3412_v26, %v3408_v34  ;;  %v2469_v30 = vrot.slane %v1881_v57, %v4577_v19  ;;  %v2544_v54 = vsel %vm6046_vm2, %v2543_v12, %v2539_v46  ;;  %v2474_v60 = vrot.slane %v1882_v15, %v4580_v44 }
 0x29c   : > { %v1035_v10 = vpack.c.bf16 %v971_v24, %v970_v49  ;;  %v3498_v45 = vsel %vm2575_vm1, %v3413_v1, %v5151_v35  ;;  %v2391_v35 = vsel %vm6041_vm8, %v2390_v13, %v2386_v22 }
 0x29d   : > { %v2396_v59 = vsel %vm1996_vm13, %v2395_v14, %v2391_v35  ;;  %v2470_v34 = vsel %vm6048_vm3, %v2469_v30, %v2465_v16 }
 0x29e   : > { %v2859_v23 = vunpack.c.l.b16 %v1035_v10  ;;  %v2860_v32 = vunpack.c.h.b16 %v1035_v10  ;;  %v2475_v53 = vsel %vm1996_vm13, %v2474_v60, %v2470_v34 }
 0x2a0   : > { %v3486_v48 = vrot.slane %v2859_v23, %v5951_v0  ;;  %v3491_v27 = vrot.slane %v2860_v32, %v5986_v11  ;;  %v1596_v21 = vpop.xlane.xlu1 %1595  ;;  %v3760_v32 = vld [vmem:[%s5888_s3] ss:$0 sm:$0xff] }
 0x2a1   : > { %v1867_v17 = vunpack.c.l.b16 %v1596_v21  ;;  %v1868_v50 = vunpack.c.h.b16 %v1596_v21  ;;  %v1671_v18 = vpop.xlane.xlu0 %1670 }
 0x2a2   : > { %v1897_v28 = vunpack.c.l.b16 %v1671_v18  ;;  %v3487_v62 = vsel %vm2003_vm14, %v3486_v48, %v3482_v36  ;;  %v1898_v37 = vunpack.c.h.b16 %v1671_v18 }
 0x2a3   : > { %v2400_v47 = vrot.slane %v1867_v17, %v5951_v0  ;;  %v2405_v42 = vrot.slane %v1868_v50, %v5986_v11  ;;  %v3492_v3 = vsel %vm2010_vm15, %v3491_v27, %v3487_v62 }
 0x2a4   : > { %v3499_v51 = vsel %vm2577_vm6, %v3492_v3, %v3498_v45  ;;  %v2548_v43 = vrot.slane %v1897_v28, %v4577_v19  ;;  %v2553_v33 = vrot.slane %v1898_v37, %v4580_v44 }
 0x2a5   : > { %v2401_v41 = vsel %vm2003_vm14, %v2400_v47, %v2396_v59  ;;  %v3500_v31 = vpack.c.b16 %v3499_v51, %v3499_v51 }
 0x2a6   : > { %v2406_v26 = vsel %vm2010_vm15, %v2405_v42, %v2401_v41  ;;  %v2549_v7 = vsel %vm6047_vm5, %v2548_v43, %v2544_v54 }
 0x2a7   : > { %3821 = vmatmul.mubr.bf16.vlgmr.msra.gmra.mrb[0].mxu1 %v3500_v31  ;;  %v2574_v29 = vsel %vm6044_vm0, %v2406_v26, %v5765_v2  ;;  %v2554_v1 = vsel %vm1996_vm13, %v2553_v33, %v2549_v7 }
 0x2a8   : > { %v1676_v9 = vpop.xlane.xlu1 %1675 }
 0x2a9   : > { %v1899_v49 = vunpack.c.l.b16 %v1676_v9  ;;  %v1900_v24 = vunpack.c.h.b16 %v1676_v9  ;;  %v1636_v19 = vpop.xlane.xlu0 %1635 }
 0x2aa   : > { %v1883_v61 = vunpack.c.l.b16 %v1636_v19  ;;  %v1884_v56 = vunpack.c.h.b16 %v1636_v19 }
 0x2ab   : > { %v2558_v2 = vrot.slane %v1899_v49, %v5951_v0  ;;  %v2563_v13 = vrot.slane %v1900_v24, %v5986_v11 }
 0x2ac   : > { %v2479_v63 = vrot.slane %v1883_v61, %v5951_v0  ;;  %v2484_v44 = vrot.slane %v1884_v56, %v5986_v11 }
 0x2ad   : > { %v2559_v58 = vsel %vm2003_vm14, %v2558_v2, %v2554_v1 }
 0x2ae   : > { %v2480_v10 = vsel %vm2003_vm14, %v2479_v63, %v2475_v53  ;;  %v2564_v45 = vsel %vm2010_vm15, %v2563_v13, %v2559_v58 }
 0x2af   : > { %v2485_v25 = vsel %vm2010_vm15, %v2484_v44, %v2480_v10 }
 0x2b0   : > { %v2576_v22 = vsel %vm2575_vm1, %v2485_v25, %v2574_v29 }
 0x2b1   : > { %v2578_v40 = vsel %vm2577_vm6, %v2564_v45, %v2576_v22 }
 0x2b2   : > { %v2579_v55 = vpack.c.b16 %v2578_v40, %v2578_v40 }
 0x2b4   : > { %3801 = vmatmul.mubr.bf16.vlgmr.msra.gmra.mrb[0].mxu0 %v2579_v55 }
 0x37a   : > { %v3584_v0 = vpop.f32.mrb[0].mxu1 }
 0x37b   : > { %v3822_v5 = vpop.f32.mrb[1].mxu1 }
 0x37c   : > { %v3587_v11 = vpop.f32.mrb[2].mxu1 }
 0x37d   : > { %v3823_v8 = vpop.f32.mrb[3].mxu1 }
 0x387   : > { %v2663_v23 = vpop.f32.mrb[0].mxu0 }
 0x388   : > { %v3585_v4 = vadd.f32 %v3584_v0, %v2663_v23  ;;  %v3802_v38 = vpop.f32.mrb[1].mxu0 }
 0x389   : > { %v2666_v35 = vpop.f32.mrb[2].mxu0 }
 0x38a   : > { %v3597_v14 = vadd.f32 %v3760_v32, %v3585_v4  ;;  %v3803_v39 = vpop.f32.mrb[3].mxu0 }
 0x38c   : > { %3598 = vst [vmem:[%s193_s9] sm:$0xff] %v3597_v14 }
 0x38d   : > { %4049 = shalt.err (!%p4046_p3)
}
 0x38e   : > { %s4050_s27 = scalar_lea.hbm %s5843_s13, 128  ;;  %s4054_s30 = scalar_lea.hbm %s5889_s4, 256 }
 0x38f   : > { %p4051_p4 = scmp.ne.s32.totalorder %s5843_s13, %s4050_s27  ;;  %p4055_p9 = scmp.lt.u32.totalorder %s5843_s13, %s5889_s4 }
 0x390   : > { %p4056_p10 = scmp.lt.u32.totalorder %s4054_s30, %s4050_s27  ;;  %p4058_p12 = scmp.lt.u32.totalorder %s4050_s27, %s5843_s13 }
 0x391   : > { %p4052_p7 = pnand %p4051_p4, %p4166_p5 }
 0x392   : > { %p4057_p11 = por %p4056_p10, %p4055_p9 }
 0x393   : > { %p4053_p8 = pneg %p4052_p7 }
 0x394   : > { %p4059_p13 = por %p4058_p12, %p4057_p11 }
 0x396   : > { %p4060_p0 = pnand %p4059_p13, %p4053_p8 }
 0x398   : > { %4063 = shalt.err (!%p4060_p0)
}
 0x399   : > { %3824 = dma.vmem_to_hbm [thread:$0]  (%p4166_p5), %s5845_s10, 128, %s5843_s13, %s3600_s14  }
 0x39a PF: > { %p3830_p1 = scmp.ge.s32.totalorder %s4098_s18, 2  ;;  %s3625_s7 = sand.u32 1, %s4086_s15  }
 0x39b   : > { %s3626_s8 = scalar_lea.sflag [#allocation3], %s3625_s7 }
 0x39c   : > { %p3827_p2 = pnand %p3830_p1, %p4170_p6 }
 0x39e   : > { %4081 = dma.done.wait (!%p3827_p2), %s3626_s8, 128  }
 0x39f   : > { %4083 = vsyncadd (!%p3827_p2), %s3626_s8, 4294967168  ;;  %p14_p3 = scmp.ge.s32.totalorder %s4153_s21, 4   ;;  %s6049_s15 = smov %s4090_s16 }
 0x3a0   : > { %s6050_s16 = smov %s4094_s17  ;;  %s6051_s17 = smov %s4164_s24 }
 0x3a1   : > { %s6052_s18 = smov %s4153_s21  ;;  %16 = sbr.rel (!%p14_p3) target bundleno = 3 (0x3), region = 71 }
 0x3a8   :  { %3631 = vsyncpa [#allocation3], 1 }
 0x3a9   :  { %3633 = vsyncpa [#allocation3 + $0x1], 1 }

</bundles_post_ra>
